<compile_context>
chip_gen: v5e
topology: v5e:2x2
jax: 0.10.0
libtpu: 0.0.40
codegen_flags: <defaults>
</compile_context>

<pallas_src>
import functools

import jax
import jax.numpy as jnp
from jax import lax
from jax.experimental import pallas as pl
from jax.experimental.pallas import tpu as pltpu


def _lstm_fc_kernel(x_ref, p_ref, out_ref, xg_ref, *, T, B, H, E_pad, C_pad):
    f32 = jnp.float32
    G2 = 8 * H  # fused gate width, column blocks: [i0 i1 f0 f1 g0 g1 o0 o1]

    # ---- static views into the packed parameter block (one-time) ----
    wih0 = p_ref[0:E_pad, :]                                    # (E_pad, 8H) incl. bias row
    w_fused = p_ref[E_pad:E_pad + 2 * H, :]                     # (2H, 8H) = [Whh0|Wih1 ; 0|Whh1]
    wfc = p_ref[E_pad + 2 * H:E_pad + 4 * H, 0:C_pad]           # (2H, C_pad), top H rows zero
    bfc = p_ref[E_pad + 4 * H:E_pad + 4 * H + 1, 0:C_pad]       # (1, C_pad)

    # ---- layer-0 input projection (+ both layers' biases via the ones-lane)
    #      for ALL timesteps in a single MXU call; stored in VMEM scratch ----
    xg_ref[...] = jnp.dot(x_ref[...], wih0, preferred_element_type=f32)

    # masks hoisted out of the recurrence
    lane8 = lax.broadcasted_iota(jnp.int32, (B, G2), 1)
    is_g = (lane8 >= 4 * H) & (lane8 < 6 * H)                   # tanh lanes (g gate, both layers)
    l0_keep = (lax.broadcasted_iota(jnp.int32, (B, 2 * H), 1) < H).astype(f32)

    def step(h, c, s):
        # ONE fused matmul: layer-0 gates @ t=s (left cols) and layer-1 gates
        # @ t=s-1 (right cols).  h = [h0_{s-1} | h1_{s-2}], c likewise.
        gates = xg_ref[s * B:(s + 1) * B, :] + jnp.dot(
            h, w_fused, preferred_element_type=f32)             # (B, 8H)
        # ONE EUP pass: i/f/o columns were pre-scaled by 0.5 in the wrapper,
        # so sigmoid(x) == 0.5*tanh(x/2) + 0.5 needs only this tanh.
        z = jnp.tanh(gates)
        a = jnp.where(is_g, z, 0.5 * z + 0.5)
        i = a[:, 0:2 * H]
        f = a[:, 2 * H:4 * H]
        g = a[:, 4 * H:6 * H]
        o = a[:, 6 * H:8 * H]
        c = f * c + i * g                                       # -> [c0_s | c1_{s-1}]
        h = o * jnp.tanh(c)                                     # -> [h0_s | h1_{s-1}]
        return h, c

    h = jnp.zeros((B, 2 * H), f32)
    c = jnp.zeros((B, 2 * H), f32)

    # prologue (s=0): only the layer-0 half is valid -> zero the layer-1 half.
    h, c = step(h, c, 0)
    h = h * l0_keep
    c = c * l0_keep
    # steady state: T-1 skewed steps, fully unrolled -> every slice is static.
    for s in range(1, T):
        h, c = step(h, c, s)
    # epilogue: one more fused step finishes layer-1 @ t=T-1 (the layer-0 half
    # and the reused xg row block's layer-0 columns are simply discarded).
    h, c = step(h, c, T - 1)

    # fc1 on h1_{T-1}: wfc rows [0:H) are zero, so the stale layer-0 half of h
    # contributes nothing and no lane slice is needed before the matmul.
    out_ref[...] = (jnp.dot(h, wfc, preferred_element_type=f32)
                    + jnp.broadcast_to(bfc, (B, C_pad)))


def _interleave_gates(a, b, H):
    """(.,4H),(.,4H) in torch order i,f,g,o -> (.,8H) blocks [ia ib fa fb ga gb oa ob]."""
    parts = []
    for k in range(4):
        parts.append(a[..., k * H:(k + 1) * H])
        parts.append(b[..., k * H:(k + 1) * H])
    return jnp.concatenate(parts, axis=-1)


def lstm_forward(x_btE, params):
    """x_btE: (B, T, E) float32 -> (B, n_classes) float32."""
    B, T, E = x_btE.shape
    H = params["whh0_T"].shape[0]
    C = params["wfc_T"].shape[1]
    f32 = jnp.float32

    B_pad = 8                                    # full sublane tile -> aligned per-step row slices
    E_pad = ((E + 1 + 127) // 128) * 128         # +1 lane holds the bias "ones" column
    C_pad = 128                                  # lane-dense FC output (no masked store)
    assert B <= B_pad and C <= C_pad and H >= C

    # ---- input: time-major, batch padded to 8 rows, ones-lane at col E for the biases ----
    x_tm = jnp.transpose(x_btE, (1, 0, 2)).astype(f32)                     # (T, B, E)
    x_tm = jnp.pad(x_tm, ((0, 0), (0, B_pad - B), (0, E_pad - E)))         # (T, B_pad, E_pad)
    x_tm = x_tm.at[:, :, E].set(1.0)                                       # bias lane
    x_flat = x_tm.reshape(T * B_pad, E_pad)

    # ---- packed parameters; fused-gate column layout [i0 i1 f0 f1 g0 g1 o0 o1] ----
    wih0_i = _interleave_gates(params["wih0_T"], jnp.zeros((E, 4 * H), f32), H)   # (E, 8H)
    bias_row = _interleave_gates(params["b0"], params["b1"], H)                   # (1, 8H)
    wih0_ext = jnp.concatenate(
        [wih0_i, bias_row, jnp.zeros((E_pad - E - 1, 8 * H), f32)], axis=0)       # (E_pad, 8H)

    w_fused = jnp.concatenate(
        [_interleave_gates(params["whh0_T"], params["wih1_T"], H),
         _interleave_gates(jnp.zeros((H, 4 * H), f32), params["whh1_T"], H)],
        axis=0)                                                                    # (2H, 8H)

    # pre-scale i/f/o columns (incl. biases) by 0.5 for the single-tanh sigmoid
    col = jnp.arange(8 * H)
    scale = jnp.where((col >= 4 * H) & (col < 6 * H), 1.0, 0.5).astype(f32)
    wih0_ext = wih0_ext * scale
    w_fused = w_fused * scale

    wfc_ext = jnp.concatenate(
        [jnp.zeros((H, C_pad), f32),
         jnp.pad(params["wfc_T"], ((0, 0), (0, C_pad - C)))], axis=0)              # (2H, C_pad)
    bfc_blk = jnp.pad(params["bfc"], ((0, 7), (0, C_pad - C)))                     # (8, C_pad)
    fc_blk = jnp.pad(jnp.concatenate([wfc_ext, bfc_blk], axis=0),
                     ((0, 0), (0, 8 * H - C_pad)))                                 # (2H+8, 8H)

    p_packed = jnp.concatenate([wih0_ext, w_fused, fc_blk], axis=0)                # (E_pad+4H+8, 8H)

    kernel = functools.partial(_lstm_fc_kernel, T=T, B=B_pad, H=H,
                               E_pad=E_pad, C_pad=C_pad)

    # NOTE: on v7x the second TensorCore stays idle at this tiny batch; for a
    # large-batch workload add a leading "parallel" grid axis over batch groups.
    out = pl.pallas_call(
        kernel,
        out_shape=jax.ShapeDtypeStruct((B_pad, C_pad), f32),
        in_specs=[pl.BlockSpec(memory_space=pltpu.MemorySpace.VMEM),
                  pl.BlockSpec(memory_space=pltpu.MemorySpace.VMEM)],
        out_specs=pl.BlockSpec(memory_space=pltpu.MemorySpace.VMEM),
        scratch_shapes=[pltpu.VMEM((T * B_pad, 8 * H), f32)],
    )(x_flat, p_packed)
    return out[:B, :C]


def lstm_reference(x_btE, params):
    """Pure-JAX reference implementing torch.nn.LSTM(2 layers) + fc1 on h[1]."""
    B, T, E = x_btE.shape
    H = params["whh0_T"].shape[0]

    def cell(inp, h, c, wih_T, whh_T, b):
        gates = inp @ wih_T + h @ whh_T + b
        i = jax.nn.sigmoid(gates[:, 0 * H:1 * H])
        f = jax.nn.sigmoid(gates[:, 1 * H:2 * H])
        g = jnp.tanh(gates[:, 2 * H:3 * H])
        o = jax.nn.sigmoid(gates[:, 3 * H:4 * H])
        c_new = f * c + i * g
        h_new = o * jnp.tanh(c_new)
        return h_new, c_new

    h0 = jnp.zeros((B, H), jnp.float32)
    c0 = jnp.zeros((B, H), jnp.float32)
    h1 = jnp.zeros((B, H), jnp.float32)
    c1 = jnp.zeros((B, H), jnp.float32)
    for t in range(T):
        x_t = x_btE[:, t, :]
        h0, c0 = cell(x_t, h0, c0, params["wih0_T"], params["whh0_T"], params["b0"])
        h1, c1 = cell(h0, h1, c1, params["wih1_T"], params["whh1_T"], params["b1"])
    return h1 @ params["wfc_T"] + params["bfc"]


def init_params(key, embedding_size, n_hidden, n_classes):
    """Deterministic synthetic parameters (shapes follow torch.nn.LSTM/Linear)."""
    H, E, C = n_hidden, embedding_size, n_classes
    ks = jax.random.split(key, 11)
    k = 1.0 / jnp.sqrt(jnp.float32(H))
    u = lambda kk, shape: jax.random.uniform(kk, shape, jnp.float32, -k, k)
    wih0 = u(ks[0], (4 * H, E))
    whh0 = u(ks[1], (4 * H, H))
    b_ih0 = u(ks[2], (4 * H,))
    b_hh0 = u(ks[3], (4 * H,))
    wih1 = u(ks[4], (4 * H, H))
    whh1 = u(ks[5], (4 * H, H))
    b_ih1 = u(ks[6], (4 * H,))
    b_hh1 = u(ks[7], (4 * H,))
    wfc = u(ks[8], (C, H))
    bfc = u(ks[9], (C,))
    return {
        "wih0_T": wih0.T, "whh0_T": whh0.T, "b0": (b_ih0 + b_hh0).reshape(1, 4 * H),
        "wih1_T": wih1.T, "whh1_T": whh1.T, "b1": (b_ih1 + b_hh1).reshape(1, 4 * H),
        "wfc_T": wfc.T, "bfc": bfc.reshape(1, C),
    }


if __name__ == "__main__":
    B, T = 2, 8
    E = 300          # embedding_size fixed by the module
    H = 32           # n_hidden
    C = 10           # n_classes

    key = jax.random.PRNGKey(0)
    kx, kp = jax.random.split(key)
    x = jax.random.normal(kx, (B, T, E), jnp.float32)   # batch_first like torch
    params = init_params(kp, E, H, C)

    out = jax.block_until_ready(lstm_forward(x, params))
    ref = jax.block_until_ready(lstm_reference(x, params))

    assert out.shape == (B, C)
    assert jnp.allclose(out, ref, rtol=1e-4, atol=1e-4), "mismatch vs reference"
    print("KERNEL_OK")
</pallas_src>

<mosaic_0001>
module attributes {stable_mosaic.version = 11 : i64} {
  func.func @_lstm_fc_kernel(%arg0: memref<64x384xf32, #tpu.memory_space<vmem>>, %arg1: memref<520x256xf32, #tpu.memory_space<vmem>>, %arg2: memref<8x128xf32, #tpu.memory_space<vmem>>, %arg3: memref<64x256xf32, #tpu.memory_space<vmem>>) attributes {dimension_semantics = [], scalar_prefetch = 0 : i64, scratch_operands = 1 : i64, tpu.core_type = #tpu.core_type<tc>} {
    %c0 = arith.constant 0 : index
    %c0_0 = arith.constant 0 : index
    %0 = vector.load %arg1[%c0, %c0_0] : memref<520x256xf32, #tpu.memory_space<vmem>>, vector<384x256xf32>
    %c384 = arith.constant 384 : index
    %c0_1 = arith.constant 0 : index
    %1 = vector.load %arg1[%c384, %c0_1] : memref<520x256xf32, #tpu.memory_space<vmem>>, vector<64x256xf32>
    %c448 = arith.constant 448 : index
    %c0_2 = arith.constant 0 : index
    %2 = vector.load %arg1[%c448, %c0_2] : memref<520x256xf32, #tpu.memory_space<vmem>>, vector<64x128xf32>
    %c512 = arith.constant 512 : index
    %c0_3 = arith.constant 0 : index
    %3 = vector.load %arg1[%c512, %c0_3] : memref<520x256xf32, #tpu.memory_space<vmem>>, vector<1x128xf32>
    %c0_4 = arith.constant 0 : index
    %c0_5 = arith.constant 0 : index
    %4 = vector.load %arg0[%c0_4, %c0_5] : memref<64x384xf32, #tpu.memory_space<vmem>>, vector<64x384xf32>
    %cst = arith.constant dense<0.000000e+00> : vector<64x256xf32>
    %5 = tpu.matmul %4, %0, %cst {dimension_numbers = #tpu.dot_dimension_numbers<[1], [0], [0], [1], [0, 0, 1, 1], [], []>} : vector<64x384xf32>, vector<384x256xf32>, vector<64x256xf32> -> vector<64x256xf32>
    %c0_6 = arith.constant 0 : index
    %c0_7 = arith.constant 0 : index
    %6 = vector.load %arg3[%c0_6, %c0_7] : memref<64x256xf32, #tpu.memory_space<vmem>>, vector<64x256xf32>
    tpu.vector_store %arg3[%c0_6, %c0_7], %5 {strides = array<i32>} : memref<64x256xf32, #tpu.memory_space<vmem>>, vector<64x256xf32>,
    %7 = tpu.iota {dimensions = array<i32: 1>} : vector<8x256xi32>
    %c128_i32 = arith.constant 128 : i32
    %8 = vector.broadcast %c128_i32 : i32 to vector<8x256xi32>
    %9 = arith.cmpi sge, %7, %8 : vector<8x256xi32>
    %c192_i32 = arith.constant 192 : i32
    %10 = vector.broadcast %c192_i32 : i32 to vector<8x256xi32>
    %11 = arith.cmpi slt, %7, %10 : vector<8x256xi32>
    %12 = arith.andi %9, %11 : vector<8x256xi1>
    %13 = tpu.iota {dimensions = array<i32: 1>} : vector<8x64xi32>
    %c32_i32 = arith.constant 32 : i32
    %14 = vector.broadcast %c32_i32 : i32 to vector<8x64xi32>
    %15 = arith.cmpi slt, %13, %14 : vector<8x64xi32>
    %16 = arith.extui %15 : vector<8x64xi1> to vector<8x64xi32>
    %17 = arith.sitofp %16 : vector<8x64xi32> to vector<8x64xf32>
    %cst_8 = arith.constant 0.000000e+00 : f32
    %18 = vector.broadcast %cst_8 : f32 to vector<8x64xf32>
    %cst_9 = arith.constant 0.000000e+00 : f32
    %19 = vector.broadcast %cst_9 : f32 to vector<8x64xf32>
    %c0_10 = arith.constant 0 : index
    %c0_11 = arith.constant 0 : index
    %20 = vector.load %arg3[%c0_10, %c0_11] : memref<64x256xf32, #tpu.memory_space<vmem>>, vector<8x256xf32>
    %cst_12 = arith.constant dense<0.000000e+00> : vector<8x256xf32>
    %21 = tpu.matmul %18, %1, %cst_12 {dimension_numbers = #tpu.dot_dimension_numbers<[1], [0], [0], [1], [0, 0, 1, 1], [], []>} : vector<8x64xf32>, vector<64x256xf32>, vector<8x256xf32> -> vector<8x256xf32>
    %22 = arith.addf %20, %21 : vector<8x256xf32>
    %23 = math.tanh %22 : vector<8x256xf32>
    %cst_13 = arith.constant 5.000000e-01 : f32
    %24 = vector.broadcast %cst_13 : f32 to vector<8x256xf32>
    %25 = arith.mulf %24, %23 : vector<8x256xf32>
    %cst_14 = arith.constant 5.000000e-01 : f32
    %26 = vector.broadcast %cst_14 : f32 to vector<8x256xf32>
    %27 = arith.addf %25, %26 : vector<8x256xf32>
    %28 = arith.select %12, %23, %27 : vector<8x256xi1>, vector<8x256xf32>
    %29 = vector.extract_strided_slice %28 {offsets = [0, 0], sizes = [8, 64], strides = [1, 1]} : vector<8x256xf32> to vector<8x64xf32>
    %30 = vector.extract_strided_slice %28 {offsets = [0, 64], sizes = [8, 64], strides = [1, 1]} : vector<8x256xf32> to vector<8x64xf32>
    %31 = vector.extract_strided_slice %28 {offsets = [0, 128], sizes = [8, 64], strides = [1, 1]} : vector<8x256xf32> to vector<8x64xf32>
    %32 = vector.extract_strided_slice %28 {offsets = [0, 192], sizes = [8, 64], strides = [1, 1]} : vector<8x256xf32> to vector<8x64xf32>
    %33 = arith.mulf %30, %19 : vector<8x64xf32>
    %34 = arith.mulf %29, %31 : vector<8x64xf32>
    %35 = arith.addf %33, %34 : vector<8x64xf32>
    %36 = math.tanh %35 : vector<8x64xf32>
    %37 = arith.mulf %32, %36 : vector<8x64xf32>
    %38 = arith.mulf %37, %17 : vector<8x64xf32>
    %39 = arith.mulf %35, %17 : vector<8x64xf32>
    %c8 = arith.constant 8 : index
    %c0_15 = arith.constant 0 : index
    %40 = vector.load %arg3[%c8, %c0_15] : memref<64x256xf32, #tpu.memory_space<vmem>>, vector<8x256xf32>
    %cst_16 = arith.constant dense<0.000000e+00> : vector<8x256xf32>
    %41 = tpu.matmul %38, %1, %cst_16 {dimension_numbers = #tpu.dot_dimension_numbers<[1], [0], [0], [1], [0, 0, 1, 1], [], []>} : vector<8x64xf32>, vector<64x256xf32>, vector<8x256xf32> -> vector<8x256xf32>
    %42 = arith.addf %40, %41 : vector<8x256xf32>
    %43 = math.tanh %42 : vector<8x256xf32>
    %cst_17 = arith.constant 5.000000e-01 : f32
    %44 = vector.broadcast %cst_17 : f32 to vector<8x256xf32>
    %45 = arith.mulf %44, %43 : vector<8x256xf32>
    %cst_18 = arith.constant 5.000000e-01 : f32
    %46 = vector.broadcast %cst_18 : f32 to vector<8x256xf32>
    %47 = arith.addf %45, %46 : vector<8x256xf32>
    %48 = arith.select %12, %43, %47 : vector<8x256xi1>, vector<8x256xf32>
    %49 = vector.extract_strided_slice %48 {offsets = [0, 0], sizes = [8, 64], strides = [1, 1]} : vector<8x256xf32> to vector<8x64xf32>
    %50 = vector.extract_strided_slice %48 {offsets = [0, 64], sizes = [8, 64], strides = [1, 1]} : vector<8x256xf32> to vector<8x64xf32>
    %51 = vector.extract_strided_slice %48 {offsets = [0, 128], sizes = [8, 64], strides = [1, 1]} : vector<8x256xf32> to vector<8x64xf32>
    %52 = vector.extract_strided_slice %48 {offsets = [0, 192], sizes = [8, 64], strides = [1, 1]} : vector<8x256xf32> to vector<8x64xf32>
    %53 = arith.mulf %50, %39 : vector<8x64xf32>
    %54 = arith.mulf %49, %51 : vector<8x64xf32>
    %55 = arith.addf %53, %54 : vector<8x64xf32>
    %56 = math.tanh %55 : vector<8x64xf32>
    %57 = arith.mulf %52, %56 : vector<8x64xf32>
    %c16 = arith.constant 16 : index
    %c0_19 = arith.constant 0 : index
    %58 = vector.load %arg3[%c16, %c0_19] : memref<64x256xf32, #tpu.memory_space<vmem>>, vector<8x256xf32>
    %cst_20 = arith.constant dense<0.000000e+00> : vector<8x256xf32>
    %59 = tpu.matmul %57, %1, %cst_20 {dimension_numbers = #tpu.dot_dimension_numbers<[1], [0], [0], [1], [0, 0, 1, 1], [], []>} : vector<8x64xf32>, vector<64x256xf32>, vector<8x256xf32> -> vector<8x256xf32>
    %60 = arith.addf %58, %59 : vector<8x256xf32>
    %61 = math.tanh %60 : vector<8x256xf32>
    %cst_21 = arith.constant 5.000000e-01 : f32
    %62 = vector.broadcast %cst_21 : f32 to vector<8x256xf32>
    %63 = arith.mulf %62, %61 : vector<8x256xf32>
    %cst_22 = arith.constant 5.000000e-01 : f32
    %64 = vector.broadcast %cst_22 : f32 to vector<8x256xf32>
    %65 = arith.addf %63, %64 : vector<8x256xf32>
    %66 = arith.select %12, %61, %65 : vector<8x256xi1>, vector<8x256xf32>
    %67 = vector.extract_strided_slice %66 {offsets = [0, 0], sizes = [8, 64], strides = [1, 1]} : vector<8x256xf32> to vector<8x64xf32>
    %68 = vector.extract_strided_slice %66 {offsets = [0, 64], sizes = [8, 64], strides = [1, 1]} : vector<8x256xf32> to vector<8x64xf32>
    %69 = vector.extract_strided_slice %66 {offsets = [0, 128], sizes = [8, 64], strides = [1, 1]} : vector<8x256xf32> to vector<8x64xf32>
    %70 = vector.extract_strided_slice %66 {offsets = [0, 192], sizes = [8, 64], strides = [1, 1]} : vector<8x256xf32> to vector<8x64xf32>
    %71 = arith.mulf %68, %55 : vector<8x64xf32>
    %72 = arith.mulf %67, %69 : vector<8x64xf32>
    %73 = arith.addf %71, %72 : vector<8x64xf32>
    %74 = math.tanh %73 : vector<8x64xf32>
    %75 = arith.mulf %70, %74 : vector<8x64xf32>
    %c24 = arith.constant 24 : index
    %c0_23 = arith.constant 0 : index
    %76 = vector.load %arg3[%c24, %c0_23] : memref<64x256xf32, #tpu.memory_space<vmem>>, vector<8x256xf32>
    %cst_24 = arith.constant dense<0.000000e+00> : vector<8x256xf32>
    %77 = tpu.matmul %75, %1, %cst_24 {dimension_numbers = #tpu.dot_dimension_numbers<[1], [0], [0], [1], [0, 0, 1, 1], [], []>} : vector<8x64xf32>, vector<64x256xf32>, vector<8x256xf32> -> vector<8x256xf32>
    %78 = arith.addf %76, %77 : vector<8x256xf32>
    %79 = math.tanh %78 : vector<8x256xf32>
    %cst_25 = arith.constant 5.000000e-01 : f32
    %80 = vector.broadcast %cst_25 : f32 to vector<8x256xf32>
    %81 = arith.mulf %80, %79 : vector<8x256xf32>
    %cst_26 = arith.constant 5.000000e-01 : f32
    %82 = vector.broadcast %cst_26 : f32 to vector<8x256xf32>
    %83 = arith.addf %81, %82 : vector<8x256xf32>
    %84 = arith.select %12, %79, %83 : vector<8x256xi1>, vector<8x256xf32>
    %85 = vector.extract_strided_slice %84 {offsets = [0, 0], sizes = [8, 64], strides = [1, 1]} : vector<8x256xf32> to vector<8x64xf32>
    %86 = vector.extract_strided_slice %84 {offsets = [0, 64], sizes = [8, 64], strides = [1, 1]} : vector<8x256xf32> to vector<8x64xf32>
    %87 = vector.extract_strided_slice %84 {offsets = [0, 128], sizes = [8, 64], strides = [1, 1]} : vector<8x256xf32> to vector<8x64xf32>
    %88 = vector.extract_strided_slice %84 {offsets = [0, 192], sizes = [8, 64], strides = [1, 1]} : vector<8x256xf32> to vector<8x64xf32>
    %89 = arith.mulf %86, %73 : vector<8x64xf32>
    %90 = arith.mulf %85, %87 : vector<8x64xf32>
    %91 = arith.addf %89, %90 : vector<8x64xf32>
    %92 = math.tanh %91 : vector<8x64xf32>
    %93 = arith.mulf %88, %92 : vector<8x64xf32>
    %c32 = arith.constant 32 : index
    %c0_27 = arith.constant 0 : index
    %94 = vector.load %arg3[%c32, %c0_27] : memref<64x256xf32, #tpu.memory_space<vmem>>, vector<8x256xf32>
    %cst_28 = arith.constant dense<0.000000e+00> : vector<8x256xf32>
    %95 = tpu.matmul %93, %1, %cst_28 {dimension_numbers = #tpu.dot_dimension_numbers<[1], [0], [0], [1], [0, 0, 1, 1], [], []>} : vector<8x64xf32>, vector<64x256xf32>, vector<8x256xf32> -> vector<8x256xf32>
    %96 = arith.addf %94, %95 : vector<8x256xf32>
    %97 = math.tanh %96 : vector<8x256xf32>
    %cst_29 = arith.constant 5.000000e-01 : f32
    %98 = vector.broadcast %cst_29 : f32 to vector<8x256xf32>
    %99 = arith.mulf %98, %97 : vector<8x256xf32>
    %cst_30 = arith.constant 5.000000e-01 : f32
    %100 = vector.broadcast %cst_30 : f32 to vector<8x256xf32>
    %101 = arith.addf %99, %100 : vector<8x256xf32>
    %102 = arith.select %12, %97, %101 : vector<8x256xi1>, vector<8x256xf32>
    %103 = vector.extract_strided_slice %102 {offsets = [0, 0], sizes = [8, 64], strides = [1, 1]} : vector<8x256xf32> to vector<8x64xf32>
    %104 = vector.extract_strided_slice %102 {offsets = [0, 64], sizes = [8, 64], strides = [1, 1]} : vector<8x256xf32> to vector<8x64xf32>
    %105 = vector.extract_strided_slice %102 {offsets = [0, 128], sizes = [8, 64], strides = [1, 1]} : vector<8x256xf32> to vector<8x64xf32>
    %106 = vector.extract_strided_slice %102 {offsets = [0, 192], sizes = [8, 64], strides = [1, 1]} : vector<8x256xf32> to vector<8x64xf32>
    %107 = arith.mulf %104, %91 : vector<8x64xf32>
    %108 = arith.mulf %103, %105 : vector<8x64xf32>
    %109 = arith.addf %107, %108 : vector<8x64xf32>
    %110 = math.tanh %109 : vector<8x64xf32>
    %111 = arith.mulf %106, %110 : vector<8x64xf32>
    %c40 = arith.constant 40 : index
    %c0_31 = arith.constant 0 : index
    %112 = vector.load %arg3[%c40, %c0_31] : memref<64x256xf32, #tpu.memory_space<vmem>>, vector<8x256xf32>
    %cst_32 = arith.constant dense<0.000000e+00> : vector<8x256xf32>
    %113 = tpu.matmul %111, %1, %cst_32 {dimension_numbers = #tpu.dot_dimension_numbers<[1], [0], [0], [1], [0, 0, 1, 1], [], []>} : vector<8x64xf32>, vector<64x256xf32>, vector<8x256xf32> -> vector<8x256xf32>
    %114 = arith.addf %112, %113 : vector<8x256xf32>
    %115 = math.tanh %114 : vector<8x256xf32>
    %cst_33 = arith.constant 5.000000e-01 : f32
    %116 = vector.broadcast %cst_33 : f32 to vector<8x256xf32>
    %117 = arith.mulf %116, %115 : vector<8x256xf32>
    %cst_34 = arith.constant 5.000000e-01 : f32
    %118 = vector.broadcast %cst_34 : f32 to vector<8x256xf32>
    %119 = arith.addf %117, %118 : vector<8x256xf32>
    %120 = arith.select %12, %115, %119 : vector<8x256xi1>, vector<8x256xf32>
    %121 = vector.extract_strided_slice %120 {offsets = [0, 0], sizes = [8, 64], strides = [1, 1]} : vector<8x256xf32> to vector<8x64xf32>
    %122 = vector.extract_strided_slice %120 {offsets = [0, 64], sizes = [8, 64], strides = [1, 1]} : vector<8x256xf32> to vector<8x64xf32>
    %123 = vector.extract_strided_slice %120 {offsets = [0, 128], sizes = [8, 64], strides = [1, 1]} : vector<8x256xf32> to vector<8x64xf32>
    %124 = vector.extract_strided_slice %120 {offsets = [0, 192], sizes = [8, 64], strides = [1, 1]} : vector<8x256xf32> to vector<8x64xf32>
    %125 = arith.mulf %122, %109 : vector<8x64xf32>
    %126 = arith.mulf %121, %123 : vector<8x64xf32>
    %127 = arith.addf %125, %126 : vector<8x64xf32>
    %128 = math.tanh %127 : vector<8x64xf32>
    %129 = arith.mulf %124, %128 : vector<8x64xf32>
    %c48 = arith.constant 48 : index
    %c0_35 = arith.constant 0 : index
    %130 = vector.load %arg3[%c48, %c0_35] : memref<64x256xf32, #tpu.memory_space<vmem>>, vector<8x256xf32>
    %cst_36 = arith.constant dense<0.000000e+00> : vector<8x256xf32>
    %131 = tpu.matmul %129, %1, %cst_36 {dimension_numbers = #tpu.dot_dimension_numbers<[1], [0], [0], [1], [0, 0, 1, 1], [], []>} : vector<8x64xf32>, vector<64x256xf32>, vector<8x256xf32> -> vector<8x256xf32>
    %132 = arith.addf %130, %131 : vector<8x256xf32>
    %133 = math.tanh %132 : vector<8x256xf32>
    %cst_37 = arith.constant 5.000000e-01 : f32
    %134 = vector.broadcast %cst_37 : f32 to vector<8x256xf32>
    %135 = arith.mulf %134, %133 : vector<8x256xf32>
    %cst_38 = arith.constant 5.000000e-01 : f32
    %136 = vector.broadcast %cst_38 : f32 to vector<8x256xf32>
    %137 = arith.addf %135, %136 : vector<8x256xf32>
    %138 = arith.select %12, %133, %137 : vector<8x256xi1>, vector<8x256xf32>
    %139 = vector.extract_strided_slice %138 {offsets = [0, 0], sizes = [8, 64], strides = [1, 1]} : vector<8x256xf32> to vector<8x64xf32>
    %140 = vector.extract_strided_slice %138 {offsets = [0, 64], sizes = [8, 64], strides = [1, 1]} : vector<8x256xf32> to vector<8x64xf32>
    %141 = vector.extract_strided_slice %138 {offsets = [0, 128], sizes = [8, 64], strides = [1, 1]} : vector<8x256xf32> to vector<8x64xf32>
    %142 = vector.extract_strided_slice %138 {offsets = [0, 192], sizes = [8, 64], strides = [1, 1]} : vector<8x256xf32> to vector<8x64xf32>
    %143 = arith.mulf %140, %127 : vector<8x64xf32>
    %144 = arith.mulf %139, %141 : vector<8x64xf32>
    %145 = arith.addf %143, %144 : vector<8x64xf32>
    %146 = math.tanh %145 : vector<8x64xf32>
    %147 = arith.mulf %142, %146 : vector<8x64xf32>
    %c56 = arith.constant 56 : index
    %c0_39 = arith.constant 0 : index
    %148 = vector.load %arg3[%c56, %c0_39] : memref<64x256xf32, #tpu.memory_space<vmem>>, vector<8x256xf32>
    %cst_40 = arith.constant dense<0.000000e+00> : vector<8x256xf32>
    %149 = tpu.matmul %147, %1, %cst_40 {dimension_numbers = #tpu.dot_dimension_numbers<[1], [0], [0], [1], [0, 0, 1, 1], [], []>} : vector<8x64xf32>, vector<64x256xf32>, vector<8x256xf32> -> vector<8x256xf32>
    %150 = arith.addf %148, %149 : vector<8x256xf32>
    %151 = math.tanh %150 : vector<8x256xf32>
    %cst_41 = arith.constant 5.000000e-01 : f32
    %152 = vector.broadcast %cst_41 : f32 to vector<8x256xf32>
    %153 = arith.mulf %152, %151 : vector<8x256xf32>
    %cst_42 = arith.constant 5.000000e-01 : f32
    %154 = vector.broadcast %cst_42 : f32 to vector<8x256xf32>
    %155 = arith.addf %153, %154 : vector<8x256xf32>
    %156 = arith.select %12, %151, %155 : vector<8x256xi1>, vector<8x256xf32>
    %157 = vector.extract_strided_slice %156 {offsets = [0, 0], sizes = [8, 64], strides = [1, 1]} : vector<8x256xf32> to vector<8x64xf32>
    %158 = vector.extract_strided_slice %156 {offsets = [0, 64], sizes = [8, 64], strides = [1, 1]} : vector<8x256xf32> to vector<8x64xf32>
    %159 = vector.extract_strided_slice %156 {offsets = [0, 128], sizes = [8, 64], strides = [1, 1]} : vector<8x256xf32> to vector<8x64xf32>
    %160 = vector.extract_strided_slice %156 {offsets = [0, 192], sizes = [8, 64], strides = [1, 1]} : vector<8x256xf32> to vector<8x64xf32>
    %161 = arith.mulf %158, %145 : vector<8x64xf32>
    %162 = arith.mulf %157, %159 : vector<8x64xf32>
    %163 = arith.addf %161, %162 : vector<8x64xf32>
    %164 = math.tanh %163 : vector<8x64xf32>
    %165 = arith.mulf %160, %164 : vector<8x64xf32>
    %c56_43 = arith.constant 56 : index
    %c0_44 = arith.constant 0 : index
    %166 = vector.load %arg3[%c56_43, %c0_44] : memref<64x256xf32, #tpu.memory_space<vmem>>, vector<8x256xf32>
    %cst_45 = arith.constant dense<0.000000e+00> : vector<8x256xf32>
    %167 = tpu.matmul %165, %1, %cst_45 {dimension_numbers = #tpu.dot_dimension_numbers<[1], [0], [0], [1], [0, 0, 1, 1], [], []>} : vector<8x64xf32>, vector<64x256xf32>, vector<8x256xf32> -> vector<8x256xf32>
    %168 = arith.addf %166, %167 : vector<8x256xf32>
    %169 = math.tanh %168 : vector<8x256xf32>
    %cst_46 = arith.constant 5.000000e-01 : f32
    %170 = vector.broadcast %cst_46 : f32 to vector<8x256xf32>
    %171 = arith.mulf %170, %169 : vector<8x256xf32>
    %cst_47 = arith.constant 5.000000e-01 : f32
    %172 = vector.broadcast %cst_47 : f32 to vector<8x256xf32>
    %173 = arith.addf %171, %172 : vector<8x256xf32>
    %174 = arith.select %12, %169, %173 : vector<8x256xi1>, vector<8x256xf32>
    %175 = vector.extract_strided_slice %174 {offsets = [0, 0], sizes = [8, 64], strides = [1, 1]} : vector<8x256xf32> to vector<8x64xf32>
    %176 = vector.extract_strided_slice %174 {offsets = [0, 64], sizes = [8, 64], strides = [1, 1]} : vector<8x256xf32> to vector<8x64xf32>
    %177 = vector.extract_strided_slice %174 {offsets = [0, 128], sizes = [8, 64], strides = [1, 1]} : vector<8x256xf32> to vector<8x64xf32>
    %178 = vector.extract_strided_slice %174 {offsets = [0, 192], sizes = [8, 64], strides = [1, 1]} : vector<8x256xf32> to vector<8x64xf32>
    %179 = arith.mulf %176, %163 : vector<8x64xf32>
    %180 = arith.mulf %175, %177 : vector<8x64xf32>
    %181 = arith.addf %179, %180 : vector<8x64xf32>
    %182 = math.tanh %181 : vector<8x64xf32>
    %183 = arith.mulf %178, %182 : vector<8x64xf32>
    %cst_48 = arith.constant dense<0.000000e+00> : vector<8x128xf32>
    %184 = tpu.matmul %183, %2, %cst_48 {dimension_numbers = #tpu.dot_dimension_numbers<[1], [0], [0], [1], [0, 0, 1, 1], [], []>} : vector<8x64xf32>, vector<64x128xf32>, vector<8x128xf32> -> vector<8x128xf32>
    %185 = vector.shape_cast %3 : vector<1x128xf32> to vector<1x128xf32>
    %186 = vector.broadcast %185 : vector<1x128xf32> to vector<8x128xf32>
    %187 = arith.addf %184, %186 : vector<8x128xf32>
    %c0_49 = arith.constant 0 : index
    %c0_50 = arith.constant 0 : index
    %188 = vector.load %arg2[%c0_49, %c0_50] : memref<8x128xf32, #tpu.memory_space<vmem>>, vector<8x128xf32>
    tpu.vector_store %arg2[%c0_49, %c0_50], %187 {strides = array<i32>} : memref<8x128xf32, #tpu.memory_space<vmem>>, vector<8x128xf32>,
    return
  }
}

</mosaic_0001>

<bundles_post_ra>
// kernel: tpu_custom_call.1
= control target key start
LH: loop header
LB: loop body
LE: loop exit
PB: predicated region body
PF: predicated region fallthrough
CT: control target
= control target key end

     0   :  { %7 = vsyncpa [#allocation4], 0  ;;  %s1658_s0 = inlined_call_operand.hbm [shape: f32[64,384], index: 0, kind: input, shape index: {}]   ;;  %s1659_s1 = inlined_call_operand.hbm [shape: f32[520,256], index: 1, kind: input, shape index: {}]   ;;  %s1660_s2 = inlined_call_operand.hbm [shape: f32[8,128], index: 2, kind: output, shape index: {}]  }
   0x1   :  { %8 = vsyncpa [#allocation7], 0 }
   0x2   :  { %9 = vsyncpa [#allocation5], 0  ;;  %s14_s11 = sshll.u32 %s1658_s0, 4  ;;  %s1263_s12 = smov [#allocation3]   ;;  %s15_s11 = int_to_ptr.hbm [resolvable:$true] %s14_s11 }
   0x3   :  { %s16_s13 = sshll.u32 %s1263_s12, 4  ;;  %s27_s16 = sshll.u32 %s1659_s1, 4  ;;  %s17_s13 = int_to_ptr.vmem [resolvable:$true] %s16_s13  ;;  %s28_s16 = int_to_ptr.hbm [resolvable:$true] %s27_s16 }
   0x4   :  { %s1264_s17 = smov 384   ;;  %s1265_s18 = smov 24  }
   0x5   :  { %22 = dma.hbm_to_vmem [thread:$0]  %s15_s11, 3072, %s17_s13, [#allocation4], %s1264_s17, %s1264_s17, %s1265_s18  }
   0x6   :  { %s1266_s19 = smov [#allocation6]   ;;  %s1267_s21 = smov 256  }
   0x7   :  { %s29_s20 = sshll.u32 %s1266_s19, 4  ;;  %s1268_s22 = smov 16   ;;  %s30_s20 = int_to_ptr.vmem [resolvable:$true] %s29_s20 }
   0x8   :  { %35 = dma.hbm_to_vmem [thread:$0]  %s28_s16, 16640, %s30_s20, [#allocation7], %s1267_s21, %s1267_s21, %s1268_s22  }
   0x9   :  { %1257 = dma.done.wait [#allocation4], 3072  }
   0xa   :  { %1258 = vsyncadd [#allocation4], 4294964224 }
   0xb   :  { %1259 = dma.done.wait [#allocation7], 16640  }
   0xc   :  { %1260 = vsyncadd [#allocation7], 4294950656  ;;  %v74_v0 = vld [vmem:[#allocation6 + $0xf0] sm:$0xff]  ;;  %v75_v2 = vld [vmem:[#allocation6 + $0xf8] sm:$0xff]  ;;  %s1270_s0 = smov 64   ;;  %vm465_vm2 = vcmask 523264  }
   0xd   :  { %v138_v1 = vld [vmem:[#allocation6 + $0x2f0] sm:$0xff]  ;;  %189 = vmatpush.msra.mxu0 %v74_v0  ;;  %v72_v3 = vld [vmem:[#allocation6 + $0xe0] sm:$0xff]  ;;  %312 = vmatpush.msra.mxu3 %v75_v2  ;;  %v73_v6 = vld [vmem:[#allocation6 + $0xe8] sm:$0xff]  ;;  %s1271_s1 = smov [#allocation8]   ;;  %s1093_s26 = sshll.u32 %s1660_s2, 4  ;;  %s1094_s26 = int_to_ptr.hbm [resolvable:$true] %s1093_s26 }
   0xe   :  { %271 = vmatpush.msra.mxu2 %v138_v1  ;;  %v106_v4 = vld [vmem:[#allocation6 + $0x1f0] sm:$0xff]  ;;  %v136_v5 = vld [vmem:[#allocation6 + $0x2e0] sm:$0xff]  ;;  %v71_v10 = vld [vmem:[#allocation6 + $0xd8] sm:$0xff]  ;;  %s1091_s23 = sshll.u32 %s1271_s1, 4  ;;  %s1092_s23 = int_to_ptr.vmem [resolvable:$true] %s1091_s23 }
   0xf   :  { %230 = vmatpush.msra.mxu1 %v106_v4  ;;  %v70_v7 = vld [vmem:[#allocation6 + $0xd0] sm:$0xff]  ;;  %v104_v8 = vld [vmem:[#allocation6 + $0x1e0] sm:$0xff]  ;;  %190 = vmatpush.msra.mxu0 %v72_v3  ;;  %v69_v14 = vld [vmem:[#allocation6 + $0xc8] sm:$0xff] }
  0x10   :  { %272 = vmatpush.msra.mxu2 %v136_v5  ;;  %v134_v9 = vld [vmem:[#allocation6 + $0x2d0] sm:$0xff]  ;;  %313 = vmatpush.msra.mxu3 %v73_v6  ;;  %v68_v11 = vld [vmem:[#allocation6 + $0xc0] sm:$0xff]  ;;  %v67_v18 = vld [vmem:[#allocation6 + $0xb8] sm:$0xff] }
  0x11   :  { %231 = vmatpush.msra.mxu1 %v104_v8  ;;  %v102_v12 = vld [vmem:[#allocation6 + $0x1d0] sm:$0xff]  ;;  %v132_v13 = vld [vmem:[#allocation6 + $0x2c0] sm:$0xff]  ;;  %191 = vmatpush.msra.mxu0 %v70_v7  ;;  %v65_v22 = vld [vmem:[#allocation6 + $0xa8] sm:$0xff] }
  0x12   :  { %273 = vmatpush.msra.mxu2 %v134_v9  ;;  %v100_v15 = vld [vmem:[#allocation6 + $0x1c0] sm:$0xff]  ;;  %314 = vmatpush.msra.mxu3 %v71_v10  ;;  %v66_v16 = vld [vmem:[#allocation6 + $0xb0] sm:$0xff]  ;;  %v63_v26 = vld [vmem:[#allocation6 + $0x98] sm:$0xff] }
  0x13   :  { %232 = vmatpush.msra.mxu1 %v102_v12  ;;  %v130_v17 = vld [vmem:[#allocation6 + $0x2b0] sm:$0xff]  ;;  %192 = vmatpush.msra.mxu0 %v68_v11  ;;  %v64_v20 = vld [vmem:[#allocation6 + $0xa0] sm:$0xff]  ;;  %v61_v30 = vld [vmem:[#allocation6 + $0x88] sm:$0xff] }
  0x14   :  { %274 = vmatpush.msra.mxu2 %v132_v13  ;;  %v98_v19 = vld [vmem:[#allocation6 + $0x1b0] sm:$0xff]  ;;  %315 = vmatpush.msra.mxu3 %v69_v14  ;;  %v128_v21 = vld [vmem:[#allocation6 + $0x2a0] sm:$0xff]  ;;  %v59_v34 = vld [vmem:[#allocation6 + $0x78] sm:$0xff] }
  0x15   :  { %233 = vmatpush.msra.mxu1 %v100_v15  ;;  %193 = vmatpush.msra.mxu0 %v66_v16  ;;  %v96_v23 = vld [vmem:[#allocation6 + $0x1a0] sm:$0xff]  ;;  %v62_v24 = vld [vmem:[#allocation6 + $0x90] sm:$0xff]  ;;  %v57_v38 = vld [vmem:[#allocation6 + $0x68] sm:$0xff] }
  0x16   :  { %275 = vmatpush.msra.mxu2 %v130_v17  ;;  %316 = vmatpush.msra.mxu3 %v67_v18  ;;  %v126_v25 = vld [vmem:[#allocation6 + $0x290] sm:$0xff]  ;;  %v60_v28 = vld [vmem:[#allocation6 + $0x80] sm:$0xff]  ;;  %v55_v42 = vld [vmem:[#allocation6 + $0x58] sm:$0xff] }
  0x17   :  { %234 = vmatpush.msra.mxu1 %v98_v19  ;;  %194 = vmatpush.msra.mxu0 %v64_v20  ;;  %v94_v27 = vld [vmem:[#allocation6 + $0x190] sm:$0xff]  ;;  %v124_v29 = vld [vmem:[#allocation6 + $0x280] sm:$0xff]  ;;  %v53_v46 = vld [vmem:[#allocation6 + $0x48] sm:$0xff] }
  0x18   :  { %276 = vmatpush.msra.mxu2 %v128_v21  ;;  %317 = vmatpush.msra.mxu3 %v65_v22  ;;  %v92_v31 = vld [vmem:[#allocation6 + $0x180] sm:$0xff]  ;;  %v58_v32 = vld [vmem:[#allocation6 + $0x70] sm:$0xff]  ;;  %v51_v50 = vld [vmem:[#allocation6 + $0x38] sm:$0xff] }
  0x19   :  { %235 = vmatpush.msra.mxu1 %v96_v23  ;;  %195 = vmatpush.msra.mxu0 %v62_v24  ;;  %v122_v33 = vld [vmem:[#allocation6 + $0x270] sm:$0xff]  ;;  %v56_v36 = vld [vmem:[#allocation6 + $0x60] sm:$0xff]  ;;  %v49_v54 = vld [vmem:[#allocation6 + $0x28] sm:$0xff] }
  0x1a   :  { %277 = vmatpush.msra.mxu2 %v126_v25  ;;  %318 = vmatpush.msra.mxu3 %v63_v26  ;;  %v90_v35 = vld [vmem:[#allocation6 + $0x170] sm:$0xff]  ;;  %v120_v37 = vld [vmem:[#allocation6 + $0x260] sm:$0xff]  ;;  %v47_v58 = vld [vmem:[#allocation6 + $0x18] sm:$0xff] }
  0x1b   :  { %236 = vmatpush.msra.mxu1 %v94_v27  ;;  %196 = vmatpush.msra.mxu0 %v60_v28  ;;  %v88_v39 = vld [vmem:[#allocation6 + $0x160] sm:$0xff]  ;;  %v54_v40 = vld [vmem:[#allocation6 + $0x50] sm:$0xff]  ;;  %v45_v62 = vld [vmem:[#allocation6 + $0x8] sm:$0xff] }
  0x1c   :  { %278 = vmatpush.msra.mxu2 %v124_v29  ;;  %319 = vmatpush.msra.mxu3 %v61_v30  ;;  %v118_v41 = vld [vmem:[#allocation6 + $0x250] sm:$0xff]  ;;  %v52_v44 = vld [vmem:[#allocation6 + $0x40] sm:$0xff]  ;;  %v1295_v1 = vld [vmem:[#allocation6 + $0x378] sm:$0xff] }
  0x1d   :  { %237 = vmatpush.msra.mxu1 %v92_v31  ;;  %197 = vmatpush.msra.mxu0 %v58_v32  ;;  %v86_v43 = vld [vmem:[#allocation6 + $0x150] sm:$0xff]  ;;  %v116_v45 = vld [vmem:[#allocation6 + $0x240] sm:$0xff]  ;;  %v1299_v4 = vld [vmem:[#allocation3 + $0x8] sm:$0xff] }
  0x1e   :  { %279 = vmatpush.msra.mxu2 %v122_v33  ;;  %320 = vmatpush.msra.mxu3 %v59_v34  ;;  %v84_v47 = vld [vmem:[#allocation6 + $0x140] sm:$0xff]  ;;  %v50_v48 = vld [vmem:[#allocation6 + $0x30] sm:$0xff]  ;;  %v107_v5 = vld [vmem:[#allocation6 + $0x1f8] sm:$0xff] }
  0x1f   :  { %238 = vmatpush.msra.mxu1 %v90_v35  ;;  %198 = vmatpush.msra.mxu0 %v56_v36  ;;  %v114_v49 = vld [vmem:[#allocation6 + $0x230] sm:$0xff]  ;;  %v48_v52 = vld [vmem:[#allocation6 + $0x20] sm:$0xff]  ;;  %v139_v6 = vld [vmem:[#allocation6 + $0x2f8] sm:$0xff] }
  0x20   :  { %280 = vmatpush.msra.mxu2 %v120_v37  ;;  %321 = vmatpush.msra.mxu3 %v57_v38  ;;  %v82_v51 = vld [vmem:[#allocation6 + $0x130] sm:$0xff]  ;;  %v112_v53 = vld [vmem:[#allocation6 + $0x220] sm:$0xff]  ;;  %v1303_v7 = vld [vmem:[#allocation6 + $0x368] sm:$0xff] }
  0x21   :  { %239 = vmatpush.msra.mxu1 %v88_v39  ;;  %199 = vmatpush.msra.mxu0 %v54_v40  ;;  %v80_v55 = vld [vmem:[#allocation6 + $0x120] sm:$0xff]  ;;  %v46_v56 = vld [vmem:[#allocation6 + $0x10] sm:$0xff]  ;;  %v105_v9 = vld [vmem:[#allocation6 + $0x1e8] sm:$0xff] }
  0x22   :  { %281 = vmatpush.msra.mxu2 %v118_v41  ;;  %322 = vmatpush.msra.mxu3 %v55_v42  ;;  %v110_v57 = vld [vmem:[#allocation6 + $0x210] sm:$0xff]  ;;  %v44_v60 = vld [vmem:[#allocation6] sm:$0xff]  ;;  %v137_v10 = vld [vmem:[#allocation6 + $0x2e8] sm:$0xff] }
  0x23   :  { %240 = vmatpush.msra.mxu1 %v86_v43  ;;  %200 = vmatpush.msra.mxu0 %v52_v44  ;;  %v78_v59 = vld [vmem:[#allocation6 + $0x110] sm:$0xff]  ;;  %v108_v61 = vld [vmem:[#allocation6 + $0x200] sm:$0xff]  ;;  %v1309_v11 = vld [vmem:[#allocation6 + $0x358] sm:$0xff] }
  0x24   :  { %282 = vmatpush.msra.mxu2 %v116_v45  ;;  %323 = vmatpush.msra.mxu3 %v53_v46  ;;  %v165_v63 = vld [vmem:[#allocation3] sm:$0xff]  ;;  %v1293_v0 = vld [vmem:[#allocation3 + $0x10] sm:$0xff]  ;;  %v168_v13 = vld [vmem:[#allocation3 + $0x18] sm:$0xff] }
  0x25   :  { %241 = vmatpush.msra.mxu1 %v84_v47  ;;  %201 = vmatpush.msra.mxu0 %v50_v48  ;;  %v76_v2 = vld [vmem:[#allocation6 + $0x100] sm:$0xff]  ;;  %v1297_v3 = vld [vmem:[#allocation6 + $0x370] sm:$0xff]  ;;  %v135_v14 = vld [vmem:[#allocation6 + $0x2d8] sm:$0xff] }
  0x26   :  { %283 = vmatpush.msra.mxu2 %v114_v49  ;;  %324 = vmatpush.msra.mxu3 %v51_v50  ;;  %v1305_v8 = vld [vmem:[#allocation6 + $0x360] sm:$0xff]  ;;  %v1311_v12 = vld [vmem:[#allocation6 + $0x350] sm:$0xff]  ;;  %v1315_v15 = vld [vmem:[#allocation3 + $0x28] sm:$0xff] }
  0x27   :  { %242 = vmatpush.msra.mxu1 %v82_v51  ;;  %202 = vmatpush.msra.mxu0 %v48_v52  ;;  %v103_v16 = vld [vmem:[#allocation6 + $0x1d8] sm:$0xff]  ;;  %v133_v17 = vld [vmem:[#allocation6 + $0x2c8] sm:$0xff]  ;;  %v1319_v18 = vld [vmem:[#allocation3 + $0x20] sm:$0xff] }
  0x28   :  { %284 = vmatpush.msra.mxu2 %v112_v53  ;;  %325 = vmatpush.msra.mxu3 %v49_v54  ;;  %v1321_v19 = vld [vmem:[#allocation6 + $0x348] sm:$0xff]  ;;  %v131_v21 = vld [vmem:[#allocation6 + $0x2b8] sm:$0xff]  ;;  %v1324_v22 = vld [vmem:[#allocation6 + $0x340] sm:$0xff] }
  0x29   :  { %243 = vmatpush.msra.mxu1 %v80_v55  ;;  %203 = vmatpush.msra.mxu0 %v46_v56  ;;  %v101_v20 = vld [vmem:[#allocation6 + $0x1c8] sm:$0xff]  ;;  %v1326_v23 = vld [vmem:[#allocation6 + $0x338] sm:$0xff]  ;;  %v1330_v26 = vld [vmem:[#allocation6 + $0x330] sm:$0xff] }
  0x2a   :  { %285 = vmatpush.msra.mxu2 %v110_v57  ;;  %326 = vmatpush.msra.mxu3 %v47_v58  ;;  %v99_v24 = vld [vmem:[#allocation6 + $0x1b8] sm:$0xff]  ;;  %v129_v25 = vld [vmem:[#allocation6 + $0x2a8] sm:$0xff]  ;;  %v171_v28 = vld [vmem:[#allocation3 + $0x30] sm:$0xff] }
  0x2b   :  { %244 = vmatpush.msra.mxu1 %v78_v59  ;;  %204 = vmatpush.msra.mxu0 %v44_v60  ;;  %v1332_v27 = vld [vmem:[#allocation6 + $0x328] sm:$0xff]  ;;  %v127_v29 = vld [vmem:[#allocation6 + $0x298] sm:$0xff]  ;;  %v1336_v30 = vld [vmem:[#allocation3 + $0x40] sm:$0xff] }
  0x2c   :  { %286 = vmatpush.msra.mxu2 %v108_v61  ;;  %327 = vmatpush.msra.mxu3 %v45_v62  ;;  %v97_v31 = vld [vmem:[#allocation6 + $0x1a8] sm:$0xff]  ;;  %v1340_v33 = vld [vmem:[#allocation3 + $0x38] sm:$0xff]  ;;  %v1342_v34 = vld [vmem:[#allocation6 + $0x320] sm:$0xff] }
  0x2d   :  { %205 = vmatmul.f32.vlgmr.msra.gmra.mxu0 %v165_v63  ;;  %287 = vmatmul.f32.vlgmr.msra.gmra.mxu2 %v1293_v0  ;;  %v125_v32 = vld [vmem:[#allocation6 + $0x288] sm:$0xff]  ;;  %v95_v35 = vld [vmem:[#allocation6 + $0x198] sm:$0xff]  ;;  %v1347_v38 = vld [vmem:[#allocation6 + $0x310] sm:$0xff] }
  0x2e   :  { %328 = vmatmul.f32.vlgmr.msra.gmra.mxu3 %v165_v63  ;;  %245 = vmatpush.msra.mxu1 %v76_v2  ;;  %v123_v36 = vld [vmem:[#allocation6 + $0x278] sm:$0xff]  ;;  %v93_v39 = vld [vmem:[#allocation6 + $0x188] sm:$0xff]  ;;  %v1355_v46 = vld [vmem:[#allocation3 + $0x50] sm:$0xff] }
  0x2f   :  { %497 = vmatpush.msrb.mxu3 %v1295_v1  ;;  %477 = vmatpush.msrb.mxu2 %v1297_v3  ;;  %v1345_v37 = vld [vmem:[#allocation6 + $0x318] sm:$0xff]  ;;  %v121_v40 = vld [vmem:[#allocation6 + $0x268] sm:$0xff]  ;;  %v1360_v50 = vld [vmem:[#allocation6 + $0x300] sm:$0xff] }
  0x30   :  { %246 = vmatmul.f32.vlgmr.msra.gmra.mxu1 %v1299_v4  ;;  %353 = vmatpush.msrb.mxu0 %v107_v5  ;;  %v174_v41 = vld [vmem:[#allocation3 + $0x48] sm:$0xff]  ;;  %v119_v42 = vld [vmem:[#allocation6 + $0x258] sm:$0xff]  ;;  %v177_v53 = vld [vmem:[#allocation3 + $0x60] sm:$0xff] }
  0x31   :  { %394 = vmatpush.msrb.mxu1 %v139_v6  ;;  %498 = vmatpush.msrb.mxu3 %v1303_v7  ;;  %v1353_v43 = vld [vmem:[#allocation3 + $0x58] sm:$0xff]  ;;  %v117_v45 = vld [vmem:[#allocation6 + $0x248] sm:$0xff]  ;;  %v1366_v55 = vld [vmem:[#allocation3 + $0x70] sm:$0xff] }
  0x32   :  { %478 = vmatpush.msrb.mxu2 %v1305_v8  ;;  %354 = vmatpush.msrb.mxu0 %v105_v9  ;;  %v91_v44 = vld [vmem:[#allocation6 + $0x178] sm:$0xff]  ;;  %v89_v47 = vld [vmem:[#allocation6 + $0x168] sm:$0xff]  ;;  %v1383_v2 = vld [vmem:[#allocation3 + $0x80] sm:$0xff] }
  0x33   :  { %395 = vmatpush.msrb.mxu1 %v137_v10  ;;  %499 = vmatpush.msrb.mxu3 %v1309_v11  ;;  %v115_v48 = vld [vmem:[#allocation6 + $0x238] sm:$0xff]  ;;  %v1358_v49 = vld [vmem:[#allocation6 + $0x308] sm:$0xff]  ;;  %v183_v6 = vld [vmem:[#allocation3 + $0x90] sm:$0xff] }
  0x34   :  { %479 = vmatpush.msrb.mxu2 %v1311_v12  ;;  %355 = vmatpush.msrb.mxu0 %v103_v16  ;;  %v87_v51 = vld [vmem:[#allocation6 + $0x158] sm:$0xff]  ;;  %v113_v52 = vld [vmem:[#allocation6 + $0x228] sm:$0xff]  ;;  %v1393_v9 = vld [vmem:[#allocation3 + $0xa0] sm:$0xff] }
  0x35   :  { %208 = vmatmul.f32.gmra.mxu0 %v168_v13  ;;  %396 = vmatpush.msrb.mxu1 %v135_v14  ;;  %v111_v54 = vld [vmem:[#allocation6 + $0x218] sm:$0xff]  ;;  %v85_v56 = vld [vmem:[#allocation6 + $0x148] sm:$0xff]  ;;  %v187_v16 = vld [vmem:[#allocation3 + $0xb0] sm:$0xff] }
  0x36   :  { %290 = vmatmul.f32.gmra.mxu2 %v1315_v15  ;;  %331 = vmatmul.f32.gmra.mxu3 %v168_v13  ;;  %v1370_v57 = vld [vmem:[#allocation3 + $0x68] sm:$0xff]  ;;  %v83_v59 = vld [vmem:[#allocation6 + $0x138] sm:$0xff] }
  0x37   :  { %397 = vmatpush.msrb.mxu1 %v133_v17  ;;  %500 = vmatpush.msrb.mxu3 %v1321_v19  ;;  %v109_v58 = vld [vmem:[#allocation6 + $0x208] sm:$0xff]  ;;  %v180_v61 = vld [vmem:[#allocation3 + $0x78] sm:$0xff]  ;;  %v1269_v17 = vmov 0.0  }
  0x38   :  { %249 = vmatmul.f32.gmra.mxu1 %v1319_v18  ;;  %356 = vmatpush.msrb.mxu0 %v101_v20  ;;  %v81_v60 = vld [vmem:[#allocation6 + $0x128] sm:$0xff]  ;;  %v79_v63 = vld [vmem:[#allocation6 + $0x118] sm:$0xff] }
  0x39   :  { %398 = vmatpush.msrb.mxu1 %v131_v21  ;;  %480 = vmatpush.msrb.mxu2 %v1324_v22  ;;  %v1378_v62 = vld [vmem:[#allocation3 + $0x88] sm:$0xff]  ;;  %v1399_v10 = vld [vmem:[#allocation3 + $0x98] sm:$0xff] }
  0x3a   :  { %501 = vmatpush.msrb.mxu3 %v1326_v23  ;;  %357 = vmatpush.msrb.mxu0 %v99_v24  ;;  %v77_v5 = vld [vmem:[#allocation6 + $0x108] sm:$0xff]  ;;  %v188_v14 = vld [vmem:[#allocation3 + $0xb8] sm:$0xff] }
  0x3b   :  { %399 = vmatpush.msrb.mxu1 %v129_v25  ;;  %481 = vmatpush.msrb.mxu2 %v1330_v26  ;;  %v186_v13 = vld [vmem:[#allocation3 + $0xa8] sm:$0xff] }
  0x3c   :  { %502 = vmatpush.msrb.mxu3 %v1332_v27  ;;  %358 = vmatpush.msrb.mxu0 %v97_v31 }
  0x3d   :  { %211 = vmatmul.f32.gmra.mxu0 %v171_v28  ;;  %400 = vmatpush.msrb.mxu1 %v127_v29 }
  0x3e   :  { %293 = vmatmul.f32.gmra.mxu2 %v1336_v30  ;;  %334 = vmatmul.f32.gmra.mxu3 %v171_v28 }
  0x3f   :  { %401 = vmatpush.msrb.mxu1 %v125_v32  ;;  %482 = vmatpush.msrb.mxu2 %v1342_v34 }
  0x40   :  { %252 = vmatmul.f32.gmra.mxu1 %v1340_v33  ;;  %359 = vmatpush.msrb.mxu0 %v95_v35 }
  0x41   :  { %402 = vmatpush.msrb.mxu1 %v123_v36  ;;  %503 = vmatpush.msrb.mxu3 %v1345_v37 }
  0x42   :  { %483 = vmatpush.msrb.mxu2 %v1347_v38  ;;  %360 = vmatpush.msrb.mxu0 %v93_v39 }
  0x43   :  { %403 = vmatpush.msrb.mxu1 %v121_v40  ;;  %504 = vmatpush.msrb.mxu3 %v1358_v49 }
  0x44   :  { %361 = vmatpush.msrb.mxu0 %v91_v44  ;;  %484 = vmatpush.msrb.mxu2 %v1360_v50 }
  0x45   :  { %214 = vmatmul.f32.gmra.mxu0 %v174_v41  ;;  %404 = vmatpush.msrb.mxu1 %v119_v42 }
  0x46   :  { %296 = vmatmul.f32.gmra.mxu2 %v1353_v43  ;;  %337 = vmatmul.f32.gmra.mxu3 %v174_v41 }
  0x47   :  { %405 = vmatpush.msrb.mxu1 %v117_v45  ;;  %362 = vmatpush.msrb.mxu0 %v89_v47 }
  0x48   :  { %255 = vmatmul.f32.gmra.mxu1 %v1355_v46  ;;  %569 = vmatpush.msra.mxu3 %v1295_v1 }
  0x49   :  { %406 = vmatpush.msrb.mxu1 %v115_v48  ;;  %363 = vmatpush.msrb.mxu0 %v87_v51 }
  0x4a   :  { %549 = vmatpush.msra.mxu2 %v1297_v3  ;;  %570 = vmatpush.msra.mxu3 %v1303_v7 }
  0x4b   :  { %407 = vmatpush.msrb.mxu1 %v113_v52  ;;  %364 = vmatpush.msrb.mxu0 %v85_v56 }
  0x4c   :  { %550 = vmatpush.msra.mxu2 %v1305_v8  ;;  %571 = vmatpush.msra.mxu3 %v1309_v11 }
  0x4d   :  { %217 = vmatmul.f32.gmra.mxu0 %v177_v53  ;;  %408 = vmatpush.msrb.mxu1 %v111_v54 }
  0x4e   :  { %299 = vmatmul.f32.gmra.mxu2 %v1366_v55  ;;  %340 = vmatmul.f32.gmra.mxu3 %v177_v53 }
  0x4f   :  { %409 = vmatpush.msrb.mxu1 %v109_v58  ;;  %365 = vmatpush.msrb.mxu0 %v83_v59 }
  0x50   :  { %258 = vmatmul.f32.gmra.mxu1 %v1370_v57  ;;  %551 = vmatpush.msra.mxu2 %v1311_v12 }
  0x51   :  { %767 = vmatpush.msra.mxu1 %v1295_v1  ;;  %366 = vmatpush.msrb.mxu0 %v81_v60 }
  0x52   :  { %572 = vmatpush.msra.mxu3 %v1321_v19  ;;  %552 = vmatpush.msra.mxu2 %v1324_v22 }
  0x53   :  { %768 = vmatpush.msra.mxu1 %v1303_v7  ;;  %367 = vmatpush.msrb.mxu0 %v79_v63 }
  0x54   :  { %573 = vmatpush.msra.mxu3 %v1326_v23  ;;  %553 = vmatpush.msra.mxu2 %v1330_v26 }
  0x55   :  { %220 = vmatmul.f32.gmra.mxu0 %v180_v61  ;;  %769 = vmatpush.msra.mxu1 %v1309_v11 }
  0x56   :  { %302 = vmatmul.f32.gmra.mxu2 %v1378_v62  ;;  %343 = vmatmul.f32.gmra.mxu3 %v180_v61 }
  0x57   :  { %574 = vmatpush.msra.mxu3 %v1332_v27  ;;  %368 = vmatpush.msrb.mxu0 %v77_v5 }
  0x58   :  { %261 = vmatmul.f32.gmra.mxu1 %v1383_v2  ;;  %554 = vmatpush.msra.mxu2 %v1342_v34 }
  0x59   :  { %575 = vmatpush.msra.mxu3 %v1345_v37  ;;  %747 = vmatpush.msra.mxu0 %v1297_v3 }
  0x5a   :  { %555 = vmatpush.msra.mxu2 %v1347_v38  ;;  %770 = vmatpush.msra.mxu1 %v1321_v19 }
  0x5b   :  { %576 = vmatpush.msra.mxu3 %v1358_v49  ;;  %748 = vmatpush.msra.mxu0 %v1305_v8 }
  0x5c   :  { %556 = vmatpush.msra.mxu2 %v1360_v50  ;;  %771 = vmatpush.msra.mxu1 %v1326_v23 }
  0x5d   :  { %223 = vmatmul.f32.gmra.mxu0 %v183_v6 }
  0x5e   :  { %305 = vmatmul.f32.gmra.mxu2 %v1393_v9  ;;  %346 = vmatmul.f32.gmra.mxu3 %v183_v6 }
  0x5f   :  { %749 = vmatpush.msra.mxu0 %v1311_v12  ;;  %772 = vmatpush.msra.mxu1 %v1332_v27 }
  0x60   :  { %264 = vmatmul.f32.gmra.mxu1 %v1399_v10 }
  0x61   :  { %750 = vmatpush.msra.mxu0 %v1324_v22  ;;  %773 = vmatpush.msra.mxu1 %v1345_v37 }
  0x63   :  { %751 = vmatpush.msra.mxu0 %v1330_v26  ;;  %774 = vmatpush.msra.mxu1 %v1358_v49 }
  0x65   :  { %226 = vmatmul.f32.gmra.mxu0 %v186_v13 }
  0x66   :  { %308 = vmatmul.f32.gmra.mxu2 %v188_v14  ;;  %349 = vmatmul.f32.gmra.mxu3 %v186_v13 }
  0x67   :  { %752 = vmatpush.msra.mxu0 %v1342_v34 }
  0x68   :  { %267 = vmatmul.f32.gmra.mxu1 %v187_v16 }
  0x69   :  { %753 = vmatpush.msra.mxu0 %v1347_v38 }
  0x6b   :  { %754 = vmatpush.msra.mxu0 %v1360_v50 }
  0x6d   :  { %369 = vmatmul.f32.vlgmr.msrb.gmra.mxu0 %v1299_v4 }
  0x6e   :  { %485 = vmatmul.f32.vlgmr.msrb.gmra.mxu2 %v1269_v17  ;;  %505 = vmatmul.f32.vlgmr.msrb.gmra.mxu3 %v1269_v17 }
  0x6f   :  { %615 = vmatpush.msrb.mxu2 %v1297_v3  ;;  %635 = vmatpush.msrb.mxu3 %v1295_v1 }
  0x70   :  { %410 = vmatmul.f32.vlgmr.msrb.gmra.mxu1 %v1293_v0  ;;  %879 = vmatpush.msrb.mxu0 %v1297_v3 }
  0x71   :  { %616 = vmatpush.msrb.mxu2 %v1305_v8  ;;  %636 = vmatpush.msrb.mxu3 %v1303_v7 }
  0x72   :  { %899 = vmatpush.msrb.mxu1 %v1295_v1  ;;  %880 = vmatpush.msrb.mxu0 %v1305_v8 }
  0x73   :  { %617 = vmatpush.msrb.mxu2 %v1311_v12  ;;  %637 = vmatpush.msrb.mxu3 %v1309_v11 }
  0x74   :  { %900 = vmatpush.msrb.mxu1 %v1303_v7  ;;  %881 = vmatpush.msrb.mxu0 %v1311_v12 }
  0x75   :  { %372 = vmatmul.f32.gmra.mxu0 %v1319_v18  ;;  %618 = vmatpush.msrb.mxu2 %v1324_v22 }
  0x76   :  { %638 = vmatpush.msrb.mxu3 %v1321_v19  ;;  %901 = vmatpush.msrb.mxu1 %v1309_v11 }
  0x77   :  { %619 = vmatpush.msrb.mxu2 %v1330_v26  ;;  %882 = vmatpush.msrb.mxu0 %v1324_v22 }
  0x78   :  { %413 = vmatmul.f32.gmra.mxu1 %v1315_v15  ;;  %639 = vmatpush.msrb.mxu3 %v1326_v23 }
  0x79   :  { %620 = vmatpush.msrb.mxu2 %v1342_v34  ;;  %902 = vmatpush.msrb.mxu1 %v1321_v19 }
  0x7a   :  { %640 = vmatpush.msrb.mxu3 %v1332_v27  ;;  %883 = vmatpush.msrb.mxu0 %v1330_v26 }
  0x7b   :  { %621 = vmatpush.msrb.mxu2 %v1347_v38  ;;  %903 = vmatpush.msrb.mxu1 %v1326_v23 }
  0x7c   :  { %641 = vmatpush.msrb.mxu3 %v1345_v37  ;;  %884 = vmatpush.msrb.mxu0 %v1342_v34 }
  0x7d   :  { %375 = vmatmul.f32.gmra.mxu0 %v1340_v33  ;;  %622 = vmatpush.msrb.mxu2 %v1360_v50 }
  0x7e   :  { %642 = vmatpush.msrb.mxu3 %v1358_v49  ;;  %904 = vmatpush.msrb.mxu1 %v1332_v27 }
  0x7f   :  { %885 = vmatpush.msrb.mxu0 %v1347_v38 }
  0x80   :  { %416 = vmatmul.f32.gmra.mxu1 %v1336_v30 }
  0x81   :  { %905 = vmatpush.msrb.mxu1 %v1345_v37  ;;  %886 = vmatpush.msrb.mxu0 %v1360_v50 }
  0x83   :  { %906 = vmatpush.msrb.mxu1 %v1358_v49 }
  0x85   :  { %378 = vmatmul.f32.gmra.mxu0 %v1355_v46 }
  0x88   :  { %419 = vmatmul.f32.gmra.mxu1 %v1353_v43 }
  0x8d   :  { %381 = vmatmul.f32.gmra.mxu0 %v1370_v57 }
  0x90   :  { %422 = vmatmul.f32.gmra.mxu1 %v1366_v55 }
  0x95   :  { %384 = vmatmul.f32.gmra.mxu0 %v1383_v2 }
  0x98   :  { %425 = vmatmul.f32.gmra.mxu1 %v1378_v62 }
  0x9d   :  { %387 = vmatmul.f32.gmra.mxu0 %v1399_v10 }
  0xa0   :  { %428 = vmatmul.f32.gmra.mxu1 %v1393_v9 }
  0xa5   :  { %390 = vmatmul.f32.gmra.mxu0 %v187_v16 }
  0xa8   :  { %431 = vmatmul.f32.gmra.mxu1 %v188_v14 }
  0xaa   :  { %v206_v0 = vpop.f32.mrf.mxu0 }
  0xad   :  { %v247_v4 = vpop.f32.mrf.mxu1 }
  0xb0   :  { %v288_v15 = vpop.f32.mrf.mxu2 }
  0xb1   :  { %v329_v18 = vpop.f32.mrf.mxu3 }
  0xb2   :  { %v209_v20 = vpop.f32.mrf.mxu0 }
  0xb5   :  { %v250_v21 = vpop.f32.mrf.mxu1 }
  0xb6   :  { %v251_v24 = vadd.f32 %v250_v21, %v209_v20 }
  0xb9   :  { %v291_v25 = vpop.f32.mrf.mxu2  ;;  %v1463_v28 = vpop.f32.mrf.mxu3 }
  0xba   :  { %v1465_v29 = vadd.f32 %v291_v25, %v251_v24  ;;  %v212_v30 = vpop.f32.mrf.mxu0  ;;  %v248_v24 = vadd.f32 %v247_v4, %v206_v0 }
  0xbc   :  { %v289_v25 = vadd.f32 %v288_v15, %v248_v24 }
  0xbd   :  { %v253_v31 = vpop.f32.mrf.mxu1 }
  0xbe   :  { %v254_v32 = vadd.f32 %v253_v31, %v212_v30 }
  0xc1   :  { %v294_v33 = vpop.f32.mrf.mxu2  ;;  %v1467_v35 = vpop.f32.mrf.mxu3 }
  0xc2   :  { %v1469_v36 = vadd.f32 %v294_v33, %v254_v32  ;;  %v215_v39 = vpop.f32.mrf.mxu0  ;;  %v451_v33 = vlaneseq }
  0xc5   :  { %v256_v40 = vpop.f32.mrf.mxu1 }
  0xc6   :  { %v257_v41 = vadd.f32 %v256_v40, %v215_v39 }
  0xc9   :  { %v297_v42 = vpop.f32.mrf.mxu2  ;;  %v1471_v43 = vpop.f32.mrf.mxu3 }
  0xca   :  { %v1473_v44 = vadd.f32 %v297_v42, %v257_v41  ;;  %v218_v45 = vpop.f32.mrf.mxu0 }
  0xcd   :  { %v259_v46 = vpop.f32.mrf.mxu1 }
  0xce   :  { %v260_v47 = vadd.f32 %v259_v46, %v218_v45  ;;  %v452_v45 = vand.u32 127, %v451_v33 }
  0xd0   :  { %v1489_v46 = vadd.s32 128, %v452_v45  ;;  %vm460_vm1 = vcmp.lt.s32.totalorder %v452_v45, 32 }
  0xd1   :  { %v300_v48 = vpop.f32.mrf.mxu2  ;;  %v1475_v51 = vpop.f32.mrf.mxu3 }
  0xd2   :  { %v1477_v52 = vadd.f32 %v300_v48, %v260_v47  ;;  %v221_v53 = vpop.f32.mrf.mxu0  ;;  %vm457_vm0 = vcmp.lt.s32.totalorder %v1489_v46, 192 }
  0xd5   :  { %v262_v54 = vpop.f32.mrf.mxu1 }
  0xd6   :  { %v263_v55 = vadd.f32 %v262_v54, %v221_v53 }
  0xd9   :  { %v303_v56 = vpop.f32.mrf.mxu2  ;;  %v344_v57 = vpop.f32.mrf.mxu3 }
  0xda   :  { %v1479_v58 = vadd.f32 %v303_v56, %v263_v55  ;;  %v224_v59 = vpop.f32.mrf.mxu0 }
  0xdd   :  { %v265_v60 = vpop.f32.mrf.mxu1 }
  0xde   :  { %v266_v61 = vadd.f32 %v265_v60, %v224_v59 }
  0xe1   :  { %v306_v62 = vpop.f32.mrf.mxu2  ;;  %v347_v63 = vpop.f32.mrf.mxu3 }
  0xe2   :  { %v1481_v2 = vadd.f32 %v306_v62, %v266_v61  ;;  %v227_v5 = vpop.f32.mrf.mxu0  ;;  %v1104_v61 = vsel %vm460_vm1, 1.0, %v1269_v17 }
  0xe5   :  { %v268_v6 = vpop.f32.mrf.mxu1 }
  0xe6   :  { %v269_v9 = vadd.f32 %v268_v6, %v227_v5 }
  0xe9   :  { %v309_v10 = vpop.f32.mrf.mxu2  ;;  %v1483_v13 = vpop.f32.mrf.mxu3 }
  0xea   :  { %v1485_v14 = vadd.f32 %v309_v10, %v269_v9  ;;  %v370_v16 = vpop.f32.mrf.mxu0 }
  0xeb   :  { %v371_v20 = vadd.f32 %v370_v16, %v329_v18 }
  0xed   :  { %v411_v21 = vpop.f32.mrf.mxu1 }
  0xee   :  { %v412_v30 = vadd.f32 %v411_v21, %v371_v20 }
  0xf1   :  { %v486_v31 = vpop.f32.mrf.mxu2  ;;  %v506_v32 = vpop.f32.mrf.mxu3 }
  0xf2   :  { %v509_v39 = vadd.f32 %v486_v31, %v289_v25  ;;  %v510_v40 = vadd.f32 %v506_v32, %v412_v30  ;;  %v1487_v41 = vpop.f32.mrf.mxu0 }
  0xf4   :  { %1131 = vtanh.f32 %v509_v39 }
  0xf5   :  { %1133 = vtanh.f32 %v510_v40  ;;  %v414_v42 = vpop.f32.mrf.mxu1 }
  0xfa   :  { %v1132_v47 = vpop.eup %1131  ;;  %v1491_v48 = vpop.f32.mrf.mxu0 }
  0xfb   :  { %v1134_v18 = vpop.eup %1133  ;;  %v513_v0 = vmul.f32 0.5, %v1132_v47 }
  0xfc   :  { %v514_v4 = vmul.f32 0.5, %v1134_v18 }
  0xfd   :  { %v515_v15 = vadd.f32 0.5, %v513_v0  ;;  %v1493_v53 = vpop.f32.mrf.mxu1 }
  0xfe   :  { %v516_v54 = vadd.f32 0.5, %v514_v4 }
  0xff   :  { %v519_v30 = vmul.f32 0.0, %v515_v15 }
 0x100   :  { %v518_v55 = vsel %vm457_vm0, %v1134_v18, %v516_v54 }
 0x101   :  { %v520_v56 = vmul.f32 %v518_v55, %v515_v15 }
 0x102   :  { %v1498_v59 = vpop.f32.mrf.mxu0 }
 0x103   :  { %522 = vrot.lane.b32.xlu0 %v520_v56, %s1270_s0 }
 0x105   :  { %v1501_v60 = vpop.f32.mrf.mxu1 }
 0x10a   :  { %v1504_v62 = vpop.f32.mrf.mxu0 }
 0x10b   :  { %529 = vrot.lane.b32.xlu0 %v1104_v61, %s1270_s0 }
 0x10d   :  { %v1507_v5 = vpop.f32.mrf.mxu1 }
 0x112   :  { %v385_v6 = vpop.f32.mrf.mxu0 }
 0x113   :  { %v386_v9 = vadd.f32 %v385_v6, %v344_v57 }
 0x115   :  { %v426_v10 = vpop.f32.mrf.mxu1 }
 0x116   :  { %v1509_v16 = vadd.f32 %v426_v10, %v386_v9 }
 0x11a   :  { %v388_v20 = vpop.f32.mrf.mxu0 }
 0x11b   :  { %v389_v21 = vadd.f32 %v388_v20, %v347_v63  ;;  %v374_v63 = vadd.f32 %v1487_v41, %v1463_v28 }
 0x11d   :  { %v429_v24 = vpop.f32.mrf.mxu1  ;;  %v415_v45 = vadd.f32 %v414_v42, %v374_v63 }
 0x11e   :  { %v1511_v25 = vadd.f32 %v429_v24, %v389_v21 }
 0x175   :  { %v523_v31 = vpop.permute.xlu0 %522 }
 0x176   :  { %v525_v32 = vadd.f32 %v523_v31, %v519_v30  ;;  %v377_v30 = vadd.f32 %v1491_v48, %v1467_v35 }
 0x178   :  { %1135 = vtanh.f32 %v525_v32  ;;  %v418_v31 = vadd.f32 %v1493_v53, %v377_v30 }
 0x17d   :  { %v530_v39 = vpop.permute.xlu0 %529 }
 0x17e   :  { %v1136_v17 = vpop.eup %1135  ;;  %v533_v61 = vmul.f32 %v530_v39, %v525_v32 }
 0x17f   :  { %v527_v33 = vmul.f32 %v1136_v17, %v518_v55 }
 0x181   :  { %v532_v40 = vmul.f32 %v530_v39, %v527_v33 }
 0x183   :  { %537 = vrot.lane.b32.xlu1 %v532_v40, %s1270_s0 }
 0x1f5   :  { %v538_v57 = vpop.permute.xlu1 %537 }
 0x1f6   :  { %1105 = vmatmul.msk.f32.vlgmr.msra.gmra.mxu2 %vm465_vm2, %v538_v57  ;;  %1106 = vmatmul.msk.f32.vlgmr.msra.gmra.mxu3 %vm465_vm2, %v538_v57 }
 0x1f7   :  { %681 = vmatpush.msra.mxu2 %v1297_v3  ;;  %701 = vmatpush.msra.mxu3 %v1295_v1 }
 0x1f9   :  { %682 = vmatpush.msra.mxu2 %v1305_v8  ;;  %702 = vmatpush.msra.mxu3 %v1303_v7 }
 0x1fb   :  { %683 = vmatpush.msra.mxu2 %v1311_v12  ;;  %703 = vmatpush.msra.mxu3 %v1309_v11 }
 0x1fd   :  { %684 = vmatpush.msra.mxu2 %v1324_v22  ;;  %704 = vmatpush.msra.mxu3 %v1321_v19 }
 0x1ff   :  { %685 = vmatpush.msra.mxu2 %v1330_v26  ;;  %705 = vmatpush.msra.mxu3 %v1326_v23 }
 0x201   :  { %686 = vmatpush.msra.mxu2 %v1342_v34  ;;  %706 = vmatpush.msra.mxu3 %v1332_v27 }
 0x203   :  { %687 = vmatpush.msra.mxu2 %v1347_v38  ;;  %707 = vmatpush.msra.mxu3 %v1345_v37 }
 0x205   :  { %688 = vmatpush.msra.mxu2 %v1360_v50  ;;  %708 = vmatpush.msra.mxu3 %v1358_v49 }
 0x279   :  { %v558_v47 = vpop.f32.mrf.mxu2  ;;  %v578_v18 = vpop.f32.mrf.mxu3 }
 0x27a   :  { %v581_v0 = vadd.f32 %v558_v47, %v1465_v29  ;;  %v582_v4 = vadd.f32 %v578_v18, %v415_v45 }
 0x27c   :  { %1137 = vtanh.f32 %v581_v0 }
 0x27d   :  { %1139 = vtanh.f32 %v582_v4 }
 0x282   :  { %v1138_v15 = vpop.eup %1137 }
 0x283   :  { %v1140_v54 = vpop.eup %1139  ;;  %v585_v55 = vmul.f32 0.5, %v1138_v15 }
 0x284   :  { %v586_v56 = vmul.f32 0.5, %v1140_v54 }
 0x285   :  { %v587_v6 = vadd.f32 0.5, %v585_v55  ;;  %v380_v55 = vadd.f32 %v1498_v59, %v1471_v43 }
 0x286   :  { %v588_v9 = vadd.f32 0.5, %v586_v56 }
 0x287   :  { %v591_v10 = vmul.f32 %v587_v6, %v533_v61  ;;  %v421_v56 = vadd.f32 %v1501_v60, %v380_v55 }
 0x288   :  { %v590_v20 = vsel %vm457_vm0, %v1140_v54, %v588_v9 }
 0x289   :  { %v592_v28 = vmul.f32 %v590_v20, %v587_v6 }
 0x28b   :  { %594 = vrot.lane.b32.xlu1 %v592_v28, %s1270_s0 }
 0x2fd   :  { %v595_v41 = vpop.permute.xlu1 %594 }
 0x2fe   :  { %v597_v42 = vadd.f32 %v595_v41, %v591_v10 }
 0x300   :  { %1141 = vtanh.f32 %v597_v42 }
 0x306   :  { %v1142_v29 = vpop.eup %1141 }
 0x307   :  { %v599_v21 = vmul.f32 %v1142_v29, %v590_v20 }
 0x309   :  { %603 = vrot.lane.b32.xlu2 %v599_v21, %s1270_s0 }
 0x363   :  { %v604_v24 = vpop.permute.xlu2 %603 }
 0x364   :  { %1107 = vmatmul.msk.f32.vlgmr.msrb.gmra.mxu2 %vm465_vm2, %v604_v24  ;;  %1108 = vmatmul.msk.f32.vlgmr.msrb.gmra.mxu3 %vm465_vm2, %v604_v24 }
 0x365   :  { %813 = vmatpush.msrb.mxu2 %v1297_v3  ;;  %833 = vmatpush.msrb.mxu3 %v1295_v1 }
 0x367   :  { %814 = vmatpush.msrb.mxu2 %v1305_v8  ;;  %834 = vmatpush.msrb.mxu3 %v1303_v7 }
 0x369   :  { %815 = vmatpush.msrb.mxu2 %v1311_v12  ;;  %835 = vmatpush.msrb.mxu3 %v1309_v11 }
 0x36b   :  { %816 = vmatpush.msrb.mxu2 %v1324_v22  ;;  %836 = vmatpush.msrb.mxu3 %v1321_v19 }
 0x36d   :  { %817 = vmatpush.msrb.mxu2 %v1330_v26  ;;  %837 = vmatpush.msrb.mxu3 %v1326_v23 }
 0x36f   :  { %818 = vmatpush.msrb.mxu2 %v1342_v34  ;;  %838 = vmatpush.msrb.mxu3 %v1332_v27 }
 0x371   :  { %819 = vmatpush.msrb.mxu2 %v1347_v38  ;;  %839 = vmatpush.msrb.mxu3 %v1345_v37 }
 0x373   :  { %820 = vmatpush.msrb.mxu2 %v1360_v50  ;;  %840 = vmatpush.msrb.mxu3 %v1358_v49 }
 0x3e7   :  { %v624_v32 = vpop.f32.mrf.mxu2  ;;  %v644_v17 = vpop.f32.mrf.mxu3 }
 0x3e8   :  { %v647_v33 = vadd.f32 %v624_v32, %v1469_v36  ;;  %v648_v39 = vadd.f32 %v644_v17, %v418_v31 }
 0x3ea   :  { %1143 = vtanh.f32 %v647_v33 }
 0x3eb   :  { %1145 = vtanh.f32 %v648_v39 }
 0x3f0   :  { %v1144_v40 = vpop.eup %1143 }
 0x3f1   :  { %v1146_v57 = vpop.eup %1145  ;;  %v651_v63 = vmul.f32 0.5, %v1144_v40 }
 0x3f2   :  { %v652_v45 = vmul.f32 0.5, %v1146_v57 }
 0x3f3   :  { %v653_v47 = vadd.f32 0.5, %v651_v63 }
 0x3f4   :  { %v654_v18 = vadd.f32 0.5, %v652_v45 }
 0x3f5   :  { %v657_v35 = vmul.f32 %v653_v47, %v597_v42 }
 0x3f6   :  { %v656_v0 = vsel %vm457_vm0, %v1146_v57, %v654_v18 }
 0x3f7   :  { %v658_v4 = vmul.f32 %v656_v0, %v653_v47 }
 0x3f9   :  { %660 = vrot.lane.b32.xlu2 %v658_v4, %s1270_s0 }
 0x453   :  { %v661_v48 = vpop.permute.xlu2 %660 }
 0x454   :  { %v663_v53 = vadd.f32 %v661_v48, %v657_v35 }
 0x456   :  { %1147 = vtanh.f32 %v663_v53 }
 0x45c   :  { %v1148_v36 = vpop.eup %1147 }
 0x45d   :  { %v665_v15 = vmul.f32 %v1148_v36, %v656_v0 }
 0x45f   :  { %669 = vrot.lane.b32.xlu0 %v665_v15, %s1270_s0 }
 0x4d1   :  { %v670_v54 = vpop.permute.xlu0 %669 }
 0x4d2   :  { %1109 = vmatmul.msk.f32.vlgmr.msra.gmra.mxu2 %vm465_vm2, %v670_v54  ;;  %1110 = vmatmul.msk.f32.vlgmr.msra.gmra.mxu3 %vm465_vm2, %v670_v54 }
 0x4d3   :  { %945 = vmatpush.msra.mxu2 %v1297_v3  ;;  %965 = vmatpush.msra.mxu3 %v1295_v1 }
 0x4d5   :  { %946 = vmatpush.msra.mxu2 %v1305_v8  ;;  %966 = vmatpush.msra.mxu3 %v1303_v7 }
 0x4d7   :  { %947 = vmatpush.msra.mxu2 %v1311_v12  ;;  %967 = vmatpush.msra.mxu3 %v1309_v11 }
 0x4d9   :  { %948 = vmatpush.msra.mxu2 %v1324_v22  ;;  %968 = vmatpush.msra.mxu3 %v1321_v19 }
 0x4db   :  { %949 = vmatpush.msra.mxu2 %v1330_v26  ;;  %969 = vmatpush.msra.mxu3 %v1326_v23 }
 0x4dd   :  { %950 = vmatpush.msra.mxu2 %v1342_v34  ;;  %970 = vmatpush.msra.mxu3 %v1332_v27 }
 0x4df   :  { %951 = vmatpush.msra.mxu2 %v1347_v38  ;;  %971 = vmatpush.msra.mxu3 %v1345_v37 }
 0x4e1   :  { %952 = vmatpush.msra.mxu2 %v1360_v50  ;;  %972 = vmatpush.msra.mxu3 %v1358_v49 }
 0x555   :  { %v690_v61 = vpop.f32.mrf.mxu2  ;;  %v710_v6 = vpop.f32.mrf.mxu3 }
 0x556   :  { %v713_v9 = vadd.f32 %v690_v61, %v1473_v44  ;;  %v714_v10 = vadd.f32 %v710_v6, %v421_v56 }
 0x558   :  { %1149 = vtanh.f32 %v713_v9 }
 0x559   :  { %1151 = vtanh.f32 %v714_v10 }
 0x55e   :  { %v1150_v20 = vpop.eup %1149 }
 0x55f   :  { %v1152_v28 = vpop.eup %1151  ;;  %v717_v41 = vmul.f32 0.5, %v1150_v20 }
 0x560   :  { %v718_v42 = vmul.f32 0.5, %v1152_v28 }
 0x561   :  { %v719_v29 = vadd.f32 0.5, %v717_v41 }
 0x562   :  { %v720_v21 = vadd.f32 0.5, %v718_v42 }
 0x563   :  { %v723_v43 = vmul.f32 %v719_v29, %v663_v53 }
 0x564   :  { %v722_v24 = vsel %vm457_vm0, %v1152_v28, %v720_v21 }
 0x565   :  { %v724_v30 = vmul.f32 %v722_v24, %v719_v29 }
 0x567   :  { %726 = vrot.lane.b32.xlu1 %v724_v30, %s1270_s0 }
 0x5d9   :  { %v727_v59 = vpop.permute.xlu1 %726 }
 0x5da   :  { %v729_v60 = vadd.f32 %v727_v59, %v723_v43 }
 0x5dc   :  { %1153 = vtanh.f32 %v729_v60 }
 0x5e2   :  { %v1154_v44 = vpop.eup %1153 }
 0x5e3   :  { %v731_v31 = vmul.f32 %v1154_v44, %v722_v24 }
 0x5e5   :  { %735 = vrot.lane.b32.xlu2 %v731_v31, %s1270_s0 }
 0x63f   :  { %v736_v32 = vpop.permute.xlu2 %735 }
 0x640   :  { %1111 = vmatmul.msk.f32.vlgmr.msra.gmra.mxu0 %vm465_vm2, %v736_v32  ;;  %1112 = vmatmul.msk.f32.vlgmr.msra.gmra.mxu1 %vm465_vm2, %v736_v32 }
 0x641   :  { %1009 = vmatpush.msra.mxu0 %v1297_v3  ;;  %1029 = vmatpush.msra.mxu1 %v1295_v1  ;;  %v1609_v1 = vpop.f32.mrf.mxu0  ;;  %v1611_v3 = vpop.f32.mrf.mxu1 }
 0x642   :  { %v392_v44 = vadd.f32 %v1609_v1, %v1483_v13 }
 0x643   :  { %1010 = vmatpush.msra.mxu0 %v1305_v8  ;;  %1030 = vmatpush.msra.mxu1 %v1303_v7  ;;  %v383_v7 = vadd.f32 %v1504_v62, %v1475_v51 }
 0x644   :  { %v433_v31 = vadd.f32 %v1611_v3, %v392_v44 }
 0x645   :  { %1011 = vmatpush.msra.mxu0 %v1311_v12  ;;  %1031 = vmatpush.msra.mxu1 %v1309_v11  ;;  %v424_v8 = vadd.f32 %v1507_v5, %v383_v7 }
 0x647   :  { %1012 = vmatpush.msra.mxu0 %v1324_v22  ;;  %1032 = vmatpush.msra.mxu1 %v1321_v19 }
 0x649   :  { %1013 = vmatpush.msra.mxu0 %v1330_v26  ;;  %1033 = vmatpush.msra.mxu1 %v1326_v23 }
 0x64b   :  { %1014 = vmatpush.msra.mxu0 %v1342_v34  ;;  %1034 = vmatpush.msra.mxu1 %v1332_v27 }
 0x64d   :  { %1015 = vmatpush.msra.mxu0 %v1347_v38  ;;  %1035 = vmatpush.msra.mxu1 %v1345_v37 }
 0x64f   :  { %1016 = vmatpush.msra.mxu0 %v1360_v50  ;;  %1036 = vmatpush.msra.mxu1 %v1358_v49 }
 0x6bd   :  { %v756_v11 = vpop.f32.mrf.mxu0  ;;  %v776_v12 = vpop.f32.mrf.mxu1 }
 0x6be   :  { %v779_v19 = vadd.f32 %v756_v11, %v1477_v52  ;;  %v780_v22 = vadd.f32 %v776_v12, %v424_v8 }
 0x6c0   :  { %1155 = vtanh.f32 %v779_v19 }
 0x6c1   :  { %1157 = vtanh.f32 %v780_v22 }
 0x6c6   :  { %v1156_v23 = vpop.eup %1155 }
 0x6c7   :  { %v1158_v26 = vpop.eup %1157  ;;  %v783_v27 = vmul.f32 0.5, %v1156_v23 }
 0x6c8   :  { %v784_v34 = vmul.f32 0.5, %v1158_v26 }
 0x6c9   :  { %v785_v37 = vadd.f32 0.5, %v783_v27 }
 0x6ca   :  { %v786_v38 = vadd.f32 0.5, %v784_v34 }
 0x6cb   :  { %v789_v51 = vmul.f32 %v785_v37, %v729_v60 }
 0x6cc   :  { %v788_v49 = vsel %vm457_vm0, %v1158_v26, %v786_v38 }
 0x6cd   :  { %v790_v50 = vmul.f32 %v788_v49, %v785_v37 }
 0x6cf   :  { %792 = vrot.lane.b32.xlu0 %v790_v50, %s1270_s0 }
 0x741   :  { %v793_v62 = vpop.permute.xlu0 %792 }
 0x742   :  { %v795_v5 = vadd.f32 %v793_v62, %v789_v51 }
 0x744   :  { %1159 = vtanh.f32 %v795_v5 }
 0x74a   :  { %v1160_v52 = vpop.eup %1159 }
 0x74b   :  { %v797_v17 = vmul.f32 %v1160_v52, %v788_v49 }
 0x74d   :  { %801 = vrot.lane.b32.xlu1 %v797_v17, %s1270_s0 }
 0x7bf   :  { %v802_v33 = vpop.permute.xlu1 %801 }
 0x7c0   :  { %1113 = vmatmul.msk.f32.vlgmr.msrb.gmra.mxu2 %vm465_vm2, %v802_v33  ;;  %1114 = vmatmul.msk.f32.vlgmr.msrb.gmra.mxu3 %vm465_vm2, %v802_v33 }
 0x843   :  { %v822_v39 = vpop.f32.mrf.mxu2  ;;  %v842_v40 = vpop.f32.mrf.mxu3 }
 0x844   :  { %v845_v57 = vadd.f32 %v822_v39, %v1479_v58  ;;  %v846_v63 = vadd.f32 %v842_v40, %v1509_v16 }
 0x846   :  { %1161 = vtanh.f32 %v845_v57 }
 0x847   :  { %1163 = vtanh.f32 %v846_v63 }
 0x84c   :  { %v1162_v45 = vpop.eup %1161 }
 0x84d   :  { %v1164_v47 = vpop.eup %1163  ;;  %v849_v18 = vmul.f32 0.5, %v1162_v45 }
 0x84e   :  { %v850_v0 = vmul.f32 0.5, %v1164_v47 }
 0x84f   :  { %v851_v4 = vadd.f32 0.5, %v849_v18  ;;  %v163_v18 = vld [vmem:[#allocation6 + $0x3f0] sm:$0xff] }
 0x850   :  { %v852_v35 = vadd.f32 0.5, %v850_v0  ;;  %v162_v0 = vld [vmem:[#allocation6 + $0x3e0] sm:$0xff]  ;;  %1073 = vmatpush.msrb.mxu2 %v163_v18 }
 0x851   :  { %v855_v36 = vmul.f32 %v851_v4, %v795_v5 }
 0x852   :  { %v854_v48 = vsel %vm457_vm0, %v1164_v47, %v852_v35  ;;  %1074 = vmatpush.msrb.mxu2 %v162_v0  ;;  %v159_v35 = vld [vmem:[#allocation6 + $0x3b0] sm:$0xff] }
 0x853   :  { %v856_v53 = vmul.f32 %v854_v48, %v851_v4  ;;  %v161_v4 = vld [vmem:[#allocation6 + $0x3d0] sm:$0xff] }
 0x854   :  { %1075 = vmatpush.msrb.mxu2 %v161_v4 }
 0x855   :  { %858 = vrot.lane.b32.xlu2 %v856_v53, %s1270_s0  ;;  %v157_v53 = vld [vmem:[#allocation6 + $0x390] sm:$0xff] }
 0x8af   :  { %v859_v15 = vpop.permute.xlu2 %858 }
 0x8b0   :  { %v861_v54 = vadd.f32 %v859_v15, %v855_v36  ;;  %v156_v36 = vld [vmem:[#allocation6 + $0x380] sm:$0xff] }
 0x8b2   :  { %1165 = vtanh.f32 %v861_v54 }
 0x8b8   :  { %v1166_v58 = vpop.eup %1165 }
 0x8b9   :  { %v863_v16 = vmul.f32 %v1166_v58, %v854_v48  ;;  %v158_v48 = vld [vmem:[#allocation6 + $0x3a0] sm:$0xff] }
 0x8bb   :  { %867 = vrot.lane.b32.xlu0 %v863_v16, %s1270_s0 }
 0x92d   :  { %v868_v55 = vpop.permute.xlu0 %867 }
 0x92e   :  { %1115 = vmatmul.msk.f32.vlgmr.msrb.gmra.mxu0 %vm465_vm2, %v868_v55  ;;  %1116 = vmatmul.msk.f32.vlgmr.msrb.gmra.mxu1 %vm465_vm2, %v868_v55 }
 0x9ab   :  { %v888_v56 = vpop.f32.mrf.mxu0  ;;  %v908_v61 = vpop.f32.mrf.mxu1 }
 0x9ac   :  { %v911_v6 = vadd.f32 %v888_v56, %v1481_v2  ;;  %v912_v9 = vadd.f32 %v908_v61, %v1511_v25  ;;  %v164_v56 = vld [vmem:[#allocation6 + $0x400] ss:$0 sm:$0xff] }
 0x9ae   :  { %1167 = vtanh.f32 %v911_v6 }
 0x9af   :  { %1169 = vtanh.f32 %v912_v9 }
 0x9b4   :  { %v1168_v10 = vpop.eup %1167 }
 0x9b5   :  { %v1170_v20 = vpop.eup %1169  ;;  %v915_v28 = vmul.f32 0.5, %v1168_v10 }
 0x9b6   :  { %v916_v41 = vmul.f32 0.5, %v1170_v20 }
 0x9b7   :  { %v917_v42 = vadd.f32 0.5, %v915_v28 }
 0x9b8   :  { %v918_v29 = vadd.f32 0.5, %v916_v41 }
 0x9b9   :  { %v921_v30 = vmul.f32 %v917_v42, %v861_v54 }
 0x9ba   :  { %v920_v21 = vsel %vm457_vm0, %v1170_v20, %v918_v29 }
 0x9bb   :  { %v922_v24 = vmul.f32 %v920_v21, %v917_v42 }
 0x9bd   :  { %924 = vrot.lane.b32.xlu1 %v922_v24, %s1270_s0 }
 0xa2f   :  { %v925_v43 = vpop.permute.xlu1 %924 }
 0xa30   :  { %v927_v59 = vadd.f32 %v925_v43, %v921_v30 }
 0xa32   :  { %1171 = vtanh.f32 %v927_v59 }
 0xa38   :  { %v1172_v2 = vpop.eup %1171 }
 0xa39   :  { %v929_v25 = vmul.f32 %v1172_v2, %v920_v21 }
 0xa3b   :  { %933 = vrot.lane.b32.xlu2 %v929_v25, %s1270_s0 }
 0xa95   :  { %v934_v60 = vpop.permute.xlu2 %933 }
 0xa96   :  { %1117 = vmatmul.msk.f32.vlgmr.msra.gmra.mxu2 %vm465_vm2, %v934_v60  ;;  %1118 = vmatmul.msk.f32.vlgmr.msra.gmra.mxu3 %vm465_vm2, %v934_v60 }
 0xb19   :  { %v954_v32 = vpop.f32.mrf.mxu2  ;;  %v974_v7 = vpop.f32.mrf.mxu3 }
 0xb1a   :  { %v977_v8 = vadd.f32 %v954_v32, %v1485_v14  ;;  %v978_v11 = vadd.f32 %v974_v7, %v433_v31 }
 0xb1c   :  { %1173 = vtanh.f32 %v977_v8 }
 0xb1d   :  { %1175 = vtanh.f32 %v978_v11 }
 0xb22   :  { %v1174_v12 = vpop.eup %1173 }
 0xb23   :  { %v1176_v19 = vpop.eup %1175  ;;  %v981_v22 = vmul.f32 0.5, %v1174_v12 }
 0xb24   :  { %v982_v23 = vmul.f32 0.5, %v1176_v19 }
 0xb25   :  { %v983_v26 = vadd.f32 0.5, %v981_v22 }
 0xb26   :  { %v984_v27 = vadd.f32 0.5, %v982_v23 }
 0xb27   :  { %v987_v13 = vmul.f32 %v983_v26, %v927_v59 }
 0xb28   :  { %v986_v34 = vsel %vm457_vm0, %v1176_v19, %v984_v27 }
 0xb29   :  { %v988_v37 = vmul.f32 %v986_v34, %v983_v26 }
 0xb2b   :  { %990 = vrot.lane.b32.xlu0 %v988_v37, %s1270_s0 }
 0xb9d   :  { %v991_v1 = vpop.permute.xlu0 %990 }
 0xb9e   :  { %v993_v3 = vadd.f32 %v991_v1, %v987_v13 }
 0xba0   :  { %1177 = vtanh.f32 %v993_v3 }
 0xba6   :  { %v1178_v38 = vpop.eup %1177 }
 0xba7   :  { %v995_v49 = vmul.f32 %v1178_v38, %v986_v34 }
 0xba9   :  { %997 = vrot.lane.b32.xlu1 %v995_v49, %s1270_s0 }
 0xc1b   :  { %v998_v50 = vpop.permute.xlu1 %997 }
 0xc1c   :  { %1119 = vmatmul.msk.f32.vlgmr.msra.gmra.mxu0 %vm465_vm2, %v998_v50  ;;  %1120 = vmatmul.msk.f32.vlgmr.msra.gmra.mxu1 %vm465_vm2, %v998_v50 }
 0xc99   :  { %v1018_v51 = vpop.f32.mrf.mxu0  ;;  %v1038_v62 = vpop.f32.mrf.mxu1 }
 0xc9a   :  { %v1041_v5 = vadd.f32 %v1018_v51, %v1485_v14  ;;  %v1042_v52 = vadd.f32 %v1038_v62, %v433_v31  ;;  %v160_v14 = vld [vmem:[#allocation6 + $0x3c0] sm:$0xff] }
 0xc9b   :  { %1076 = vmatpush.msrb.mxu2 %v160_v14 }
 0xc9c   :  { %1179 = vtanh.f32 %v1041_v5 }
 0xc9d   :  { %1181 = vtanh.f32 %v1042_v52  ;;  %1077 = vmatpush.msrb.mxu2 %v159_v35 }
 0xc9f   :  { %1078 = vmatpush.msrb.mxu2 %v158_v48 }
 0xca1   :  { %1079 = vmatpush.msrb.mxu2 %v157_v53 }
 0xca2   :  { %v1180_v17 = vpop.eup %1179 }
 0xca3   :  { %v1182_v33 = vpop.eup %1181  ;;  %v1045_v39 = vmul.f32 0.5, %v1180_v17  ;;  %1080 = vmatpush.msrb.mxu2 %v156_v36 }
 0xca4   :  { %v1046_v40 = vmul.f32 0.5, %v1182_v33 }
 0xca5   :  { %v1047_v57 = vadd.f32 0.5, %v1045_v39 }
 0xca6   :  { %v1048_v63 = vadd.f32 0.5, %v1046_v40 }
 0xca7   :  { %v1051_v46 = vmul.f32 %v1047_v57, %v993_v3 }
 0xca8   :  { %v1050_v45 = vsel %vm457_vm0, %v1182_v33, %v1048_v63 }
 0xca9   :  { %v1052_v47 = vmul.f32 %v1050_v45, %v1047_v57 }
 0xcab   :  { %1054 = vrot.lane.b32.xlu2 %v1052_v47, %s1270_s0 }
 0xd05   :  { %v1055_v15 = vpop.permute.xlu2 %1054 }
 0xd06   :  { %v1057_v54 = vadd.f32 %v1055_v15, %v1051_v46 }
 0xd08   :  { %1183 = vtanh.f32 %v1057_v54 }
 0xd0e   :  { %v1184_v58 = vpop.eup %1183 }
 0xd0f   :  { %v1059_v16 = vmul.f32 %v1184_v58, %v1050_v45 }
 0xd11   :  { %1061 = vrot.lane.b32.xlu0 %v1059_v16, %s1270_s0 }
 0xd83   :  { %v1062_v55 = vpop.permute.xlu0 %1061 }
 0xd84   :  { %1121 = vmatmul.msk.f32.vlgmr.msrb.gmra.mxu2 %vm465_vm2, %v1062_v55 }
 0xe07   :  { %v1082_v61 = vpop.f32.mrf.mxu2 }
 0xe08   :  { %v1083_v6 = vadd.f32 %v1082_v61, %v164_v56 }
 0xe0a   :  { %1085 = vst [vmem:[#allocation8] sm:$0xff] %v1083_v6 }
 0xe0b   :  { %1096 = dma.vmem_to_hbm [thread:$0]  %s1092_s23, 128, %s1094_s26, [#allocation5]  }
 0xe0c   :  { %1261 = dma.done.wait [#allocation5], 128  }
 0xe0d   :  { %1262 = vsyncadd [#allocation5], 4294967168 }
 0xe0e   :  { %1101 = vsyncpa [#allocation4], 1 }
 0xe0f   :  { %1102 = vsyncpa [#allocation7], 1 }
 0xe10   :  { %1103 = vsyncpa [#allocation5], 1 }

</bundles_post_ra>
